<compile_context>
chip_gen: v5e
topology: v5e:2x2
jax: 0.10.0
libtpu: 0.0.40
codegen_flags: <defaults>
</compile_context>

<pallas_src>
import numpy as np
from functools import lru_cache

import jax
import jax.numpy as jnp
from jax import lax
from jax.experimental import pallas as pl
from jax.experimental.pallas import tpu as pltpu


def _round_up(x, m):
    return (x + m - 1) // m * m


def _choose_tm(M):
    """Largest row tile with <= 6% padding waste."""
    if M <= 128:
        return _round_up(M, 8)
    for tm in (1024, 512, 256, 128):
        if (_round_up(M, tm) - M) <= 0.06 * M:
            return tm
    return 128


def _choose_tk(K):
    """Reduction tile: full extent for non-128-multiple K, else a big divisor."""
    if K % 128 != 0:
        return K
    for cand in (1024, 768, 512, 384, 256, 128):
        if K % cand == 0:
            return cand
    return 128


def _choose_tn(N):
    """Output-channel tile: full extent for small N, else a 128-multiple divisor."""
    # TODO(synk): N=32/64 conv outputs stay lane-sparse (masked stores); padding
    # them to 128 and slicing back is a measured trade-off not taken here.
    if N % 128 != 0:
        return N
    for cand in (1024, 512, 384, 256, 128):
        if N % cand == 0:
            return cand
    return 128


# ----------------------------------------------------------------------------
# Pallas kernel 1: tiled bf16 matmul + bias (every conv-as-matmul & the head)
# ----------------------------------------------------------------------------
def _matmul_kernel(a_ref, w_ref, b_ref, o_ref, acc_ref):
    @pl.when(pl.program_id(2) == 0)
    def _():
        acc_ref[...] = jnp.zeros_like(acc_ref)

    acc_ref[...] += jnp.dot(a_ref[...], w_ref[...],
                            preferred_element_type=jnp.float32)

    @pl.when(pl.program_id(2) == pl.num_programs(2) - 1)
    def _():
        o_ref[...] = (acc_ref[...] + b_ref[...]).astype(o_ref.dtype)


@lru_cache(maxsize=None)
def _matmul_call(Mp, Kp, N, tm, tk, tn, vmem_limit):
    cp_kwargs = dict(dimension_semantics=("parallel", "parallel", "arbitrary"))
    if vmem_limit is not None:
        cp_kwargs["vmem_limit_bytes"] = vmem_limit
    return pl.pallas_call(
        _matmul_kernel,
        out_shape=jax.ShapeDtypeStruct((Mp, N), jnp.float32),
        grid_spec=pltpu.PrefetchScalarGridSpec(
            num_scalar_prefetch=0,
            grid=(Mp // tm, N // tn, Kp // tk),
            in_specs=[
                pl.BlockSpec((tm, tk), lambda i, j, k: (i, k)),
                pl.BlockSpec((tk, tn), lambda i, j, k: (k, j)),
                pl.BlockSpec((1, tn), lambda i, j, k: (0, j)),
            ],
            out_specs=pl.BlockSpec((tm, tn), lambda i, j, k: (i, j)),
            scratch_shapes=[pltpu.VMEM((tm, tn), jnp.float32)],
        ),
        compiler_params=pltpu.CompilerParams(**cp_kwargs),
    )


def matmul_bias(a, w_p, b_p, resident_lhs=False):
    """(M,K) @ (Kp,N) + (N,).  a: f32 or bf16; w_p: bf16 (Kp = K rounded to 16);
    b_p: f32 (1, N).  Output f32 (M, N).
    resident_lhs=True keeps the whole (tm, Kp) LHS panel VMEM-resident across
    all N tiles (tk = Kp, A's index map independent of j) - used for the
    small-M / huge-N head matmul to avoid redundant A re-reads."""
    M, K = a.shape
    Kp, N = w_p.shape
    tm = _choose_tm(M)
    tk = Kp if resident_lhs else _choose_tk(Kp)
    tn = _choose_tn(N)
    Mp = _round_up(M, tm)
    a = a.astype(jnp.bfloat16)          # no-op when the producer is already bf16
    if Mp != M or Kp != K:
        a = jnp.pad(a, ((0, Mp - M), (0, Kp - K)))   # cast fuses into this copy
    vmem = 40 * 1024 * 1024 if resident_lhs else None
    out = _matmul_call(Mp, Kp, N, tm, tk, tn, vmem)(a, w_p, b_p)
    return out[:M] if Mp != M else out


# ----------------------------------------------------------------------------
# Pallas kernels 2a/2b: two-pass LayerNorm([C,H,W]) + ReLU (NHWC, H-tiled)
# ----------------------------------------------------------------------------
def _ln_stats_kernel(x_ref, s_ref, q_ref):
    @pl.when(pl.program_id(2) == 0)
    def _():
        s_ref[...] = jnp.zeros_like(s_ref)
        q_ref[...] = jnp.zeros_like(q_ref)

    x = x_ref[...]                                            # (1, th, W, tc) f32
    s_ref[...] += jnp.sum(jnp.sum(x, axis=2), axis=1, keepdims=True)
    q_ref[...] += jnp.sum(jnp.sum(x * x, axis=2), axis=1, keepdims=True)


@lru_cache(maxsize=None)
def _ln_stats_call(N, H, W, C, th, tc):
    return pl.pallas_call(
        _ln_stats_kernel,
        out_shape=(jax.ShapeDtypeStruct((N, 1, C), jnp.float32),
                   jax.ShapeDtypeStruct((N, 1, C), jnp.float32)),
        grid_spec=pltpu.PrefetchScalarGridSpec(
            num_scalar_prefetch=0,
            grid=(N, C // tc, H // th),
            in_specs=[pl.BlockSpec((1, th, W, tc), lambda n, c, h: (n, h, 0, c))],
            out_specs=(pl.BlockSpec((1, 1, tc), lambda n, c, h: (n, 0, c)),
                       pl.BlockSpec((1, 1, tc), lambda n, c, h: (n, 0, c))),
        ),
        compiler_params=pltpu.CompilerParams(
            dimension_semantics=("parallel", "parallel", "arbitrary")),
    )


def _ln_apply_kernel(x_ref, g_ref, b_ref, mu_ref, inv_ref, o_ref):
    x = x_ref[...]                                            # f32
    g = g_ref[...].astype(jnp.float32)                        # bf16 params
    b = b_ref[...].astype(jnp.float32)
    y = (x - mu_ref[...]) * inv_ref[...] * g + b
    o_ref[...] = jnp.maximum(y, 0.0).astype(o_ref.dtype)      # bf16 store


@lru_cache(maxsize=None)
def _ln_apply_call(N, H, W, C, th, tc):
    return pl.pallas_call(
        _ln_apply_kernel,
        out_shape=jax.ShapeDtypeStruct((N, H, W, C), jnp.bfloat16),
        grid_spec=pltpu.PrefetchScalarGridSpec(
            num_scalar_prefetch=0,
            grid=(N, H // th, C // tc),
            in_specs=[
                pl.BlockSpec((1, th, W, tc), lambda n, h, c: (n, h, 0, c)),
                pl.BlockSpec((1, th, W, tc), lambda n, h, c: (0, h, 0, c)),
                pl.BlockSpec((1, th, W, tc), lambda n, h, c: (0, h, 0, c)),
                pl.BlockSpec((1, 1, 1, 1), lambda n, h, c: (n, 0, 0, 0)),
                pl.BlockSpec((1, 1, 1, 1), lambda n, h, c: (n, 0, 0, 0)),
            ],
            out_specs=pl.BlockSpec((1, th, W, tc), lambda n, h, c: (n, h, 0, c)),
        ),
        compiler_params=pltpu.CompilerParams(
            dimension_semantics=("parallel", "parallel", "parallel")),
    )


def layernorm_relu(x, gamma, beta):
    """x: (N,H,W,C) f32; gamma,beta: (1,H,W,C) bf16.  LayerNorm over (C,H,W)
    + ReLU, bf16 output (next consumer is a bf16 MXU matmul)."""
    N, H, W, C = x.shape
    tc = C if C <= 128 else 128
    th = 25 if H % 25 == 0 else H
    s, q = _ln_stats_call(N, H, W, C, th, tc)(x)
    cnt = float(H * W * C)
    s1 = jnp.sum(s.reshape(N, C), axis=-1)
    q1 = jnp.sum(q.reshape(N, C), axis=-1)
    mean = s1 / cnt
    # TODO(synk): single-pass E[x^2]-E[x]^2 variance (f32, clamped) can cancel
    # for large-|mean| inputs; a shifted two-pass form would cost one extra read.
    var = jnp.maximum(q1 / cnt - mean * mean, 0.0)
    inv = lax.rsqrt(var + 1e-5)
    return _ln_apply_call(N, H, W, C, th, tc)(
        x, gamma, beta, mean.reshape(N, 1, 1, 1), inv.reshape(N, 1, 1, 1))


# ----------------------------------------------------------------------------
# Pallas kernel 3: frequency softmax + scale-weighted sum, amplitude exp_sigmoid
# ----------------------------------------------------------------------------
_LOG10 = float(np.log(10.0))
_NK = 100          # harmonics
_KH = 128          # lane-dense padded harmonic dim
_F = 64            # softmax / scale dim


def _head_kernel(fl_ref, al_ref, sc_ref, f_ref, a_ref):
    logits = fl_ref[...]                                  # (tm, 64, 128) scale-major
    m = jnp.max(logits, axis=1, keepdims=True)
    e = jnp.exp(logits - m)
    p = e / jnp.sum(e, axis=1, keepdims=True)             # exact reciprocal
    f_ref[...] = jnp.sum(p * sc_ref[...], axis=1)         # (tm, 128), lane-dense
    # exp_sigmoid (DDSP default): 2.0 * sigmoid(x)**log(10) + 1e-7
    a = al_ref[...]
    sig = 1.0 / (1.0 + jnp.exp(-a))
    a_ref[...] = 2.0 * jnp.exp(_LOG10 * jnp.log(sig)) + 1e-7


@lru_cache(maxsize=None)
def _head_call(Mp, tm):
    return pl.pallas_call(
        _head_kernel,
        out_shape=(jax.ShapeDtypeStruct((Mp, _KH), jnp.float32),
                   jax.ShapeDtypeStruct((Mp, _KH), jnp.float32)),
        grid_spec=pltpu.PrefetchScalarGridSpec(
            num_scalar_prefetch=0,
            grid=(Mp // tm,),
            in_specs=[
                pl.BlockSpec((tm, _F, _KH), lambda i: (i, 0, 0)),
                pl.BlockSpec((tm, _KH), lambda i: (i, 0)),
                pl.BlockSpec((1, _F, 1), lambda i: (0, 0, 0)),
            ],
            out_specs=(pl.BlockSpec((tm, _KH), lambda i: (i, 0)),
                       pl.BlockSpec((tm, _KH), lambda i: (i, 0))),
        ),
        compiler_params=pltpu.CompilerParams(
            dimension_semantics=("parallel",)),
    )


# ----------------------------------------------------------------------------
# Conv helpers (NHWC glue + Pallas matmul)
# ----------------------------------------------------------------------------
def conv_1xk(x, w_p, b_p, kw, stride, pad):
    """NHWC Conv2d with kernel (1, kw), stride (1, stride), padding (0, pad)."""
    N, H, W, Ci = x.shape
    if pad:
        x = jnp.pad(x, ((0, 0), (0, 0), (pad, pad), (0, 0)))
    Wp = W + 2 * pad
    Wout = (Wp - kw) // stride + 1
    if kw == 1 and stride == 1:
        a = x
    else:
        # TODO(synk): the kw=3 im2col concat materializes a 3xCi slab; folding
        # the taps into the matmul grid would remove that HBM round trip.
        hi = stride * (Wout - 1) + 1
        views = [x[:, :, k:k + hi:stride, :] for k in range(kw)]
        a = views[0] if kw == 1 else jnp.concatenate(views, axis=-1)
    y = matmul_bias(a.reshape(N * H * Wout, kw * Ci), w_p, b_p)
    return y.reshape(N, H, Wout, -1)


def stem_forward(x, w_p, b_p):
    """7x7 stem conv (stride (1,2), pad 3) + MaxPool2d((1,3), stride (1,2)), NHWC."""
    N, H, W, Ci = x.shape
    xp = jnp.pad(x, ((0, 0), (3, 3), (3, 3), (0, 0))).astype(jnp.bfloat16)
    Hout = H
    Wout = (W + 6 - 7) // 2 + 1
    h_idx = jnp.arange(Hout)[:, None] + jnp.arange(7)[None, :]
    w_idx = jnp.arange(Wout)[:, None] * 2 + jnp.arange(7)[None, :]
    patches = xp[:, h_idx[:, None, :, None], w_idx[None, :, None, :], :]
    a = patches.reshape(N * Hout * Wout, 7 * 7 * Ci)      # feature order (kh, kw, ci)
    y = matmul_bias(a, w_p, b_p).reshape(N, Hout, Wout, -1)
    # TODO(synk): MaxPool2d((1,3), stride (1,2)) kept as cheap JAX slice+max glue.
    Wo2 = (Wout - 3) // 2 + 1
    hi = 2 * (Wo2 - 1) + 1
    s0 = y[:, :, 0:hi:2, :]
    s1 = y[:, :, 1:1 + hi:2, :]
    s2 = y[:, :, 2:2 + hi:2, :]
    return jnp.maximum(jnp.maximum(s0, s1), s2)


def resblock_forward(p, x, stride):
    # TODO(synk): LN statistics could be fused into the producing conv epilogue
    # to save one full activation read per LayerNorm.
    if stride == 2:
        res = conv_1xk(x, p['fc_w'], p['fc_b'], kw=1, stride=2, pad=1)   # other_first_conv
    else:
        res = conv_1xk(x, p['fc_w'], p['fc_b'], kw=1, stride=1, pad=0)   # first_conv
    out = layernorm_relu(x, p['ln1_g'], p['ln1_b'])                      # bf16
    out = conv_1xk(out, p['c1_w'], p['c1_b'], kw=1, stride=1, pad=0)
    out = layernorm_relu(out, p['ln2_g'], p['ln2_b'])
    out = conv_1xk(out, p['c2_w'], p['c2_b'], kw=3, stride=stride, pad=0)
    out = layernorm_relu(out, p['ln34_g'], p['ln34_b'])
    # conv3 is a 1x1 conv with width padding (0,1): zero-padded edge columns
    # produce bias-only outputs, exactly as in the PyTorch reference.
    out = conv_1xk(out, p['c3_w'], p['c3_b'], kw=1, stride=1, pad=1)
    return out + res


def head_forward(feat, hw, hb, scale):
    """Fused frequency+amplitude dense -> softmax-weighted sum / exp_sigmoid."""
    M = feat.shape[0]
    # One HBM-bound matmul over the fused weight; LHS panel kept VMEM-resident.
    logits = matmul_bias(feat, hw, hb, resident_lhs=True)       # (M, 6400 + 128)
    tm = 128
    Mp = _round_up(M, tm)
    fl = jnp.pad(logits[:, :_F * _NK].reshape(M, _F, _NK),
                 ((0, Mp - M), (0, 0), (0, _KH - _NK)))          # (Mp, 64, 128)
    al = jnp.pad(logits[:, _F * _NK:], ((0, Mp - M), (0, 0)))    # (Mp, 128)
    freq, amp = _head_call(Mp, tm)(fl, al, scale.reshape(1, _F, 1))
    # Padded harmonic columns / rows are garbage by construction and sliced off.
    return freq[:M, :_NK], amp[:M, :_NK]


_stem_jit = jax.jit(stem_forward)
_resblock_jit = jax.jit(resblock_forward, static_argnums=(2,))
_head_jit = jax.jit(head_forward)


# ----------------------------------------------------------------------------
# Parameter init (deterministic, in-script; weights stored pre-transposed bf16)
# ----------------------------------------------------------------------------
def _prep_matmul_w(w_mat, b):
    K, N = w_mat.shape
    Kp = _round_up(K, 16)                                  # bf16 sublane packing
    w_p = jnp.pad(w_mat, ((0, Kp - K), (0, 0))).astype(jnp.bfloat16)
    b_p = b.reshape(1, N).astype(jnp.float32)
    return w_p, b_p


def _conv_weight(key, co, ci, kh, kw):
    k1, k2 = jax.random.split(key)
    fan_in = ci * kh * kw
    w = jax.random.normal(k1, (co, ci, kh, kw), jnp.float32) * np.sqrt(2.0 / fan_in)
    b = jax.random.normal(k2, (co,), jnp.float32) * 0.01
    w_mat = w.transpose(2, 3, 1, 0).reshape(kh * kw * ci, co)   # (kh,kw,ci) feature order
    return _prep_matmul_w(w_mat, b)


BLOCK_CFG = [(64, 128, 125, 57, 1), (128, 128, 125, 57, 1), (128, 256, 125, 57, 2),
             (256, 256, 125, 30, 1), (256, 256, 125, 30, 1), (256, 512, 125, 30, 2),
             (512, 512, 125, 16, 1), (512, 512, 125, 16, 1), (512, 512, 125, 16, 1),
             (512, 1024, 125, 16, 2), (1024, 1024, 125, 9, 1), (1024, 1024, 125, 9, 1)]


def init_resblock(key, in_ch, out_ch, time, freq, stride):
    keys = jax.random.split(key, 4)
    mid = out_ch // 4
    p = {}
    # only the 1x1 residual conv actually used by forward() for this stride
    p['fc_w'], p['fc_b'] = _conv_weight(keys[0], out_ch, in_ch, 1, 1)
    # LayerNorm affine params (default ones/zeros), stored bf16 NHWC for the kernel
    p['ln1_g'] = jnp.ones((1, time, freq, in_ch), jnp.bfloat16)
    p['ln1_b'] = jnp.zeros((1, time, freq, in_ch), jnp.bfloat16)
    p['c1_w'], p['c1_b'] = _conv_weight(keys[1], mid, in_ch, 1, 1)
    p['ln2_g'] = jnp.ones((1, time, freq, mid), jnp.bfloat16)
    p['ln2_b'] = jnp.zeros((1, time, freq, mid), jnp.bfloat16)
    p['c2_w'], p['c2_b'] = _conv_weight(keys[2], mid, mid, 1, 3)
    f2 = (freq - 3) // 2 + 1 if stride == 2 else freq - 2
    p['ln34_g'] = jnp.ones((1, time, f2, mid), jnp.bfloat16)
    p['ln34_b'] = jnp.zeros((1, time, f2, mid), jnp.bfloat16)
    p['c3_w'], p['c3_b'] = _conv_weight(keys[3], out_ch, mid, 1, 1)
    return p


def init_params(key):
    keys = jax.random.split(key, 4)
    params = {}
    params['stem_w'], params['stem_b'] = _conv_weight(keys[0], 64, 1, 7, 7)
    bkeys = jax.random.split(keys[1], len(BLOCK_CFG))
    params['blocks'] = [init_resblock(k, *cfg) for k, cfg in zip(bkeys, BLOCK_CFG)]
    # Fused head weight: frequency columns in scale-major order (f, k) so the
    # logits reshape (M, 64, 100) is free, then the amp columns padded 100->128.
    # (For a real torch checkpoint the freq columns would be permuted
    #  w.reshape(9216, 100, 64).transpose(0, 2, 1) - our init is random, so we
    #  generate directly in that layout.)
    k1, k2 = jax.random.split(keys[2])
    fw = jax.random.normal(k1, (9 * 1024, _F, _NK), jnp.float32) * np.sqrt(1.0 / (9 * 1024))
    fb = jax.random.normal(k2, (_F, _NK), jnp.float32) * 0.01
    k3, k4 = jax.random.split(keys[3])
    aw = jax.random.normal(k3, (9 * 1024, _NK), jnp.float32) * np.sqrt(1.0 / (9 * 1024))
    ab = jax.random.normal(k4, (_NK,), jnp.float32) * 0.01
    # TODO(synk): head weight could be int8/fp8 quantized (HBM-bound read);
    # left in bf16 pending accuracy validation.
    w = jnp.concatenate([fw.reshape(9 * 1024, _F * _NK),
                         jnp.pad(aw, ((0, 0), (0, _KH - _NK)))], axis=1)
    b = jnp.concatenate([fb.reshape(_F * _NK), jnp.pad(ab, (0, _KH - _NK))])
    params['head_w'], params['head_b'] = _prep_matmul_w(w, b)
    # torch.logspace(log2(20), log2(8000), 64, base=2)
    params['scale'] = (2.0 ** jnp.linspace(np.log2(20.0), np.log2(8000.0), 64)
                       ).astype(jnp.float32)
    return params


# ----------------------------------------------------------------------------
# Forward pass (external interface stays NCHW like the PyTorch module)
# ----------------------------------------------------------------------------
def sin_map_to_frequency(params, x):
    xh = jnp.transpose(x, (0, 2, 3, 1))                       # NCHW -> NHWC
    out = _stem_jit(xh, params['stem_w'], params['stem_b'])   # (B, 125, 57, 64)
    for bp, cfg in zip(params['blocks'], BLOCK_CFG):
        out = _resblock_jit(bp, out, cfg[4])
    B, H, W, C = out.shape                                    # (B, 125, 9, 1024)
    # PyTorch: rearrange 'z a b c -> z b c a' then reshape (B, 125, 9*1024);
    # NHWC already has that memory order -> free reshape.
    feat = out.reshape(B * H, W * C)
    freq, amp = _head_jit(feat, params['head_w'], params['head_b'], params['scale'])
    frequency = freq.reshape(B, H, _NK)                       # (B, 125, 100)
    amplitude = amp.reshape(B, H, _NK)                        # (B, 125, 100)
    return frequency, amplitude


if __name__ == "__main__":
    key = jax.random.PRNGKey(0)
    pkey, xkey = jax.random.split(key)
    params = init_params(pkey)
    # Input implied by the hard-coded ResNet/head shapes: (B, 1, 125, 229)
    x = jax.random.normal(xkey, (2, 1, 125, 229), jnp.float32)
    frequency, amplitude = sin_map_to_frequency(params, x)
    jax.block_until_ready((frequency, amplitude))
    assert frequency.shape == (2, 125, 100), frequency.shape
    assert amplitude.shape == (2, 125, 100), amplitude.shape
    assert bool(jnp.all(jnp.isfinite(frequency))) and bool(jnp.all(jnp.isfinite(amplitude)))
    print("KERNEL_OK")
</pallas_src>

<mosaic_0001>
module attributes {stable_mosaic.version = 11 : i64} {
  func.func @_matmul_kernel(%arg0: i32, %arg1: i32, %arg2: i32, %arg3: memref<1024x64xbf16, #tpu.memory_space<vmem>>, %arg4: memref<64x64xbf16, #tpu.memory_space<vmem>>, %arg5: memref<1x64xf32, #tpu.memory_space<vmem>>, %arg6: memref<1024x64xf32, #tpu.memory_space<vmem>>, %arg7: memref<1024x64xf32, #tpu.memory_space<vmem>>) attributes {dimension_semantics = [#tpu.dimension_semantics<parallel>, #tpu.dimension_semantics<parallel>, #tpu.dimension_semantics<arbitrary>], iteration_bounds = array<i64: 29, 1, 1>, scalar_prefetch = 0 : i64, scratch_operands = 1 : i64, tpu.core_type = #tpu.core_type<tc>, window_params = [{transform_indices = @transform_0, window_bounds = array<i64: 1024, 64>}, {transform_indices = @transform_1, window_bounds = array<i64: 64, 64>}, {transform_indices = @transform_2, window_bounds = array<i64: 1, 64>}, {transform_indices = @transform_3, window_bounds = array<i64: 1024, 64>}]} {
    %c0_i32 = arith.constant 0 : i32
    %0 = arith.cmpi eq, %arg2, %c0_i32 : i32
    %1 = arith.extui %0 : i1 to i32
    %c0_i32_0 = arith.constant 0 : i32
    %2 = arith.cmpi ne, %1, %c0_i32_0 : i32
    scf.if %2 {
      %cst_10 = arith.constant 0.000000e+00 : f32
      %12 = vector.broadcast %cst_10 : f32 to vector<1024x64xf32>
      %c0_11 = arith.constant 0 : index
      %c0_12 = arith.constant 0 : index
      %13 = vector.load %arg7[%c0_11, %c0_12] : memref<1024x64xf32, #tpu.memory_space<vmem>>, vector<1024x64xf32>
      tpu.vector_store %arg7[%c0_11, %c0_12], %12 {strides = array<i32>} : memref<1024x64xf32, #tpu.memory_space<vmem>>, vector<1024x64xf32>,
    } else {
    }
    %c0 = arith.constant 0 : index
    %c0_1 = arith.constant 0 : index
    %3 = vector.load %arg7[%c0, %c0_1] : memref<1024x64xf32, #tpu.memory_space<vmem>>, vector<1024x64xf32>
    %c0_2 = arith.constant 0 : index
    %c0_3 = arith.constant 0 : index
    %4 = vector.load %arg3[%c0_2, %c0_3] : memref<1024x64xbf16, #tpu.memory_space<vmem>>, vector<1024x64xbf16>
    %c0_4 = arith.constant 0 : index
    %c0_5 = arith.constant 0 : index
    %5 = vector.load %arg4[%c0_4, %c0_5] : memref<64x64xbf16, #tpu.memory_space<vmem>>, vector<64x64xbf16>
    %cst = arith.constant dense<0.000000e+00> : vector<1024x64xf32>
    %6 = tpu.matmul %4, %5, %cst {dimension_numbers = #tpu.dot_dimension_numbers<[1], [0], [0], [1], [0, 0, 1, 1], [], []>} : vector<1024x64xbf16>, vector<64x64xbf16>, vector<1024x64xf32> -> vector<1024x64xf32>
    %7 = arith.addf %3, %6 : vector<1024x64xf32>
    %c0_6 = arith.constant 0 : index
    %c0_7 = arith.constant 0 : index
    %8 = vector.load %arg7[%c0_6, %c0_7] : memref<1024x64xf32, #tpu.memory_space<vmem>>, vector<1024x64xf32>
    tpu.vector_store %arg7[%c0_6, %c0_7], %7 {strides = array<i32>} : memref<1024x64xf32, #tpu.memory_space<vmem>>, vector<1024x64xf32>,
    %c0_i32_8 = arith.constant 0 : i32
    %9 = arith.cmpi eq, %arg2, %c0_i32_8 : i32
    %10 = arith.extui %9 : i1 to i32
    %c0_i32_9 = arith.constant 0 : i32
    %11 = arith.cmpi ne, %10, %c0_i32_9 : i32
    scf.if %11 {
      %c0_10 = arith.constant 0 : index
      %c0_11 = arith.constant 0 : index
      %12 = vector.load %arg7[%c0_10, %c0_11] : memref<1024x64xf32, #tpu.memory_space<vmem>>, vector<1024x64xf32>
      %c0_12 = arith.constant 0 : index
      %c0_13 = arith.constant 0 : index
      %13 = vector.load %arg5[%c0_12, %c0_13] : memref<1x64xf32, #tpu.memory_space<vmem>>, vector<1x64xf32>
      %14 = vector.broadcast %13 : vector<1x64xf32> to vector<1024x64xf32>
      %15 = arith.addf %12, %14 : vector<1024x64xf32>
      %c0_14 = arith.constant 0 : index
      %c0_15 = arith.constant 0 : index
      %16 = vector.load %arg6[%c0_14, %c0_15] : memref<1024x64xf32, #tpu.memory_space<vmem>>, vector<1024x64xf32>
      tpu.vector_store %arg6[%c0_14, %c0_15], %15 {strides = array<i32>} : memref<1024x64xf32, #tpu.memory_space<vmem>>, vector<1024x64xf32>,
    } else {
    }
    return
  }
  func.func @transform_0(%arg0: i32, %arg1: i32, %arg2: i32) -> (i32, i32) {
    %c0_i32 = arith.constant 0 : i32
    return %arg0, %arg2 : i32, i32
  }
  func.func @transform_1(%arg0: i32, %arg1: i32, %arg2: i32) -> (i32, i32) {
    %c0_i32 = arith.constant 0 : i32
    return %arg2, %arg1 : i32, i32
  }
  func.func @transform_2(%arg0: i32, %arg1: i32, %arg2: i32) -> (i32, i32) {
    %c0_i32 = arith.constant 0 : i32
    %c0_i32_0 = arith.constant 0 : i32
    return %c0_i32, %arg1 : i32, i32
  }
  func.func @transform_3(%arg0: i32, %arg1: i32, %arg2: i32) -> (i32, i32) {
    %c0_i32 = arith.constant 0 : i32
    return %arg0, %arg1 : i32, i32
  }
}

</mosaic_0001>

<bundles_post_ra>
// kernel: stem_forward.1
= control target key start
LH: loop header
LB: loop body
LE: loop exit
PB: predicated region body
PF: predicated region fallthrough
CT: control target
= control target key end

     0   :  { %s2783_s12 = smov 0   ;;  %s2785_s13 = smov 0   ;;  %s4018_s0 = inlined_call_operand.vmem [shape: bf16[29696,64], index: 0, kind: input, shape index: {}]   ;;  %s4019_s1 = inlined_call_operand.vmem [shape: bf16[64,64], index: 1, kind: input, shape index: {}]   ;;  %s4020_s2 = inlined_call_operand.vmem [shape: f32[1,64], index: 2, kind: input, shape index: {}]   ;;  %s4021_s3 = inlined_call_operand.vmem [shape: f32[29696,64], index: 3, kind: output, shape index: {}]  }
   0x1   :  { %s2787_s14 = smov 0  }
   0x2 LB: > { %s32_s15 = sadd.s32 1, %s2756_s13  ;;  %p2287_p0 = scmp.ge.s32.totalorder %s2760_s14, 1  ;;  %s2760_s14 = sphi %s2787_s14, %s13_s14   ;;  %s2756_s13 = sphi %s2785_s13, %s4023_s13   ;;  %s2752_s12 = sphi %s2783_s12, %s4022_s12  }
   0x3   : > { %p34_p1 = scmp.ge.s32.totalorder %s32_s15, 29  ;;  %p188_p2 = scmp.lt.s32.totalorder %s2760_s14, 30 }
   0x5   : > { %s4025_s15 = smov (%p34_p1, %s32_s15), 0  ;;  %p189_p3 = pnand %p2287_p0, %p188_p2 }
   0x6   : > { %s2288_s18 = sshll.u32 (!%p189_p3), %s2752_s12, 7 }
   0x7   : > { %192 = sbr.rel (%p189_p3) target bundleno = 427 (0x1ab), region = 32  ;;  %p230_p4 = scmp.lt.s32.totalorder (!%p189_p3), %s2288_s18, 3711 }
   0xc   : > { %v2697_v0 = vld [vmem:[%s4019_s1 + $0x18] sm:$0xff]  ;;  %v2696_v1 = vld [vmem:[%s4019_s1 + $0x10] sm:$0xff]  ;;  %s4027_s18 = smov (!%p230_p4, %s2288_s18), 3711  ;;  %v2695_v2 = vld [vmem:[%s4019_s1 + $0x8] sm:$0xff]  ;;  %vm264_vm0 = vcmask 523264   ;;  %v2762_v28 = vmov 0.0  }
   0xd   : > { %1198 = vmatpush.bf16.msra.mxu0 %v2697_v0  ;;  %2698 = vmatpush.bf16.msra.mxu1 %v2697_v0  ;;  %s2289_s23 = sshll.u32 %s4027_s18, 2  ;;  %v2694_v3 = vld [vmem:[%s4019_s1] sm:$0xff]  ;;  %265 = vst.msk [vmem:[#allocation2] sm:$0xff] %vm264_vm0, %v2762_v28  ;;  %s2291_s29 = sshll.u32 %s4027_s18, 3 }
   0xe   : > { %2699 = vmatpush.bf16.msra.mxu2 %v2697_v0  ;;  %2700 = vmatpush.bf16.msra.mxu3 %v2697_v0  ;;  %s2819_s28 = scalar_lea.vmem %s4018_s0, %s2289_s23  ;;  %266 = vst.msk [vmem:[#allocation2 + $0x8] sm:$0xff] %vm264_vm0, %v2762_v28  ;;  %v2988_v40 = vld [vmem:[%s4020_s2] ss:$0 sm:$0xff]  ;;  %s2999_s7 = scalar_lea.vmem %s4021_s3, %s2291_s29 }
   0xf   : > { %v2630_v4 = vld [vmem:[%s2819_s28] sm:$0xff]  ;;  %v2631_v8 = vld [vmem:[%s2819_s28 + $0x8] sm:$0xff]  ;;  %v2632_v12 = vld [vmem:[%s2819_s28 + $0x10] sm:$0xff]  ;;  %267 = vst.msk [vmem:[#allocation2 + $0x10] sm:$0xff] %vm264_vm0, %v2762_v28 }
  0x10   : > { %v2646_v5 = vld [vmem:[%s2819_s28 + $0x80] sm:$0xff]  ;;  %v2647_v9 = vld [vmem:[%s2819_s28 + $0x88] sm:$0xff]  ;;  %v2648_v13 = vld [vmem:[%s2819_s28 + $0x90] sm:$0xff]  ;;  %268 = vst.msk [vmem:[#allocation2 + $0x18] sm:$0xff] %vm264_vm0, %v2762_v28 }
  0x11   : > { %1199 = vmatpush.bf16.msra.mxu0 %v2696_v1  ;;  %2701 = vmatpush.bf16.msra.mxu1 %v2696_v1  ;;  %v2662_v6 = vld [vmem:[%s2819_s28 + $0x100] sm:$0xff]  ;;  %v2663_v10 = vld [vmem:[%s2819_s28 + $0x108] sm:$0xff]  ;;  %v2664_v14 = vld [vmem:[%s2819_s28 + $0x110] sm:$0xff]  ;;  %269 = vst.msk [vmem:[#allocation2 + $0x20] sm:$0xff] %vm264_vm0, %v2762_v28 }
  0x12   : > { %2702 = vmatpush.bf16.msra.mxu2 %v2696_v1  ;;  %2703 = vmatpush.bf16.msra.mxu3 %v2696_v1  ;;  %v2678_v7 = vld [vmem:[%s2819_s28 + $0x180] sm:$0xff]  ;;  %v2679_v11 = vld [vmem:[%s2819_s28 + $0x188] sm:$0xff]  ;;  %v2680_v15 = vld [vmem:[%s2819_s28 + $0x190] sm:$0xff]  ;;  %270 = vst.msk [vmem:[#allocation2 + $0x28] sm:$0xff] %vm264_vm0, %v2762_v28 }
  0x13   : > { %v2633_v16 = vld [vmem:[%s2819_s28 + $0x18] sm:$0xff]  ;;  %v2634_v20 = vld [vmem:[%s2819_s28 + $0x20] sm:$0xff]  ;;  %v2635_v24 = vld [vmem:[%s2819_s28 + $0x28] sm:$0xff]  ;;  %271 = vst.msk [vmem:[#allocation2 + $0x30] sm:$0xff] %vm264_vm0, %v2762_v28 }
  0x14   : > { %v2649_v17 = vld [vmem:[%s2819_s28 + $0x98] sm:$0xff]  ;;  %v2650_v21 = vld [vmem:[%s2819_s28 + $0xa0] sm:$0xff]  ;;  %v2651_v25 = vld [vmem:[%s2819_s28 + $0xa8] sm:$0xff]  ;;  %272 = vst.msk [vmem:[#allocation2 + $0x38] sm:$0xff] %vm264_vm0, %v2762_v28 }
  0x15   : > { %1200 = vmatpush.bf16.msra.mxu0 %v2695_v2  ;;  %2704 = vmatpush.bf16.msra.mxu1 %v2695_v2  ;;  %v2665_v18 = vld [vmem:[%s2819_s28 + $0x118] sm:$0xff]  ;;  %v2666_v22 = vld [vmem:[%s2819_s28 + $0x120] sm:$0xff]  ;;  %v2667_v26 = vld [vmem:[%s2819_s28 + $0x128] sm:$0xff]  ;;  %273 = vst.msk [vmem:[#allocation2 + $0x40] sm:$0xff] %vm264_vm0, %v2762_v28 }
  0x16   : > { %2705 = vmatpush.bf16.msra.mxu2 %v2695_v2  ;;  %2706 = vmatpush.bf16.msra.mxu3 %v2695_v2  ;;  %v2681_v19 = vld [vmem:[%s2819_s28 + $0x198] sm:$0xff]  ;;  %v2682_v23 = vld [vmem:[%s2819_s28 + $0x1a0] sm:$0xff]  ;;  %v2683_v27 = vld [vmem:[%s2819_s28 + $0x1a8] sm:$0xff]  ;;  %274 = vst.msk [vmem:[#allocation2 + $0x48] sm:$0xff] %vm264_vm0, %v2762_v28 }
  0x17   : > { %v2636_v29 = vld [vmem:[%s2819_s28 + $0x30] sm:$0xff]  ;;  %275 = vst.msk [vmem:[#allocation2 + $0x50] sm:$0xff] %vm264_vm0, %v2762_v28  ;;  %v2637_v33 = vld [vmem:[%s2819_s28 + $0x38] sm:$0xff]  ;;  %v393_v37 = vld [vmem:[#allocation2] sm:$0xff] }
  0x18   : > { %v2652_v30 = vld [vmem:[%s2819_s28 + $0xb0] sm:$0xff]  ;;  %276 = vst.msk [vmem:[#allocation2 + $0x58] sm:$0xff] %vm264_vm0, %v2762_v28  ;;  %v2653_v34 = vld [vmem:[%s2819_s28 + $0xb8] sm:$0xff]  ;;  %v2638_v44 = vld [vmem:[%s2819_s28 + $0x40] sm:$0xff] }
  0x19   : > { %1201 = vmatpush.bf16.msra.mxu0 %v2694_v3  ;;  %2707 = vmatpush.bf16.msra.mxu1 %v2694_v3  ;;  %v2668_v31 = vld [vmem:[%s2819_s28 + $0x130] sm:$0xff]  ;;  %277 = vst.msk [vmem:[#allocation2 + $0x60] sm:$0xff] %vm264_vm0, %v2762_v28  ;;  %v2669_v35 = vld [vmem:[%s2819_s28 + $0x138] sm:$0xff]  ;;  %v2654_v45 = vld [vmem:[%s2819_s28 + $0xc0] sm:$0xff] }
  0x1a   : > { %2708 = vmatpush.bf16.msra.mxu2 %v2694_v3  ;;  %2709 = vmatpush.bf16.msra.mxu3 %v2694_v3  ;;  %v2684_v32 = vld [vmem:[%s2819_s28 + $0x1b0] sm:$0xff]  ;;  %278 = vst.msk [vmem:[#allocation2 + $0x68] sm:$0xff] %vm264_vm0, %v2762_v28  ;;  %v2685_v36 = vld [vmem:[%s2819_s28 + $0x1b8] sm:$0xff]  ;;  %v2670_v46 = vld [vmem:[%s2819_s28 + $0x140] sm:$0xff] }
  0x1b   : > { %279 = vst.msk [vmem:[#allocation2 + $0x70] sm:$0xff] %vm264_vm0, %v2762_v28  ;;  %v2686_v47 = vld [vmem:[%s2819_s28 + $0x1c0] sm:$0xff]  ;;  %v2639_v56 = vld [vmem:[%s2819_s28 + $0x48] sm:$0xff] }
  0x1c   : > { %2564 = vmatmul.msk.bf16.vlgmr.msra.gmra.mxu0 %vm264_vm0, %v2630_v4  ;;  %2580 = vmatmul.msk.bf16.vlgmr.msra.gmra.mxu1 %vm264_vm0, %v2646_v5  ;;  %280 = vst.msk [vmem:[#allocation2 + $0x78] sm:$0xff] %vm264_vm0, %v2762_v28  ;;  %v2655_v57 = vld [vmem:[%s2819_s28 + $0xc8] sm:$0xff] }
  0x1d   : > { %2596 = vmatmul.msk.bf16.vlgmr.msra.gmra.mxu2 %vm264_vm0, %v2662_v6  ;;  %2612 = vmatmul.msk.bf16.vlgmr.msra.gmra.mxu3 %vm264_vm0, %v2678_v7  ;;  %281 = vst.msk [vmem:[#allocation2 + $0x80] sm:$0xff] %vm264_vm0, %v2762_v28  ;;  %v2671_v58 = vld [vmem:[%s2819_s28 + $0x148] sm:$0xff] }
  0x1e   : > { %282 = vst.msk [vmem:[#allocation2 + $0x88] sm:$0xff] %vm264_vm0, %v2762_v28  ;;  %v2687_v59 = vld [vmem:[%s2819_s28 + $0x1c8] sm:$0xff] }
  0x1f   : > { %283 = vst.msk [vmem:[#allocation2 + $0x90] sm:$0xff] %vm264_vm0, %v2762_v28  ;;  %v394_v5 = vld [vmem:[#allocation2 + $0x8] sm:$0xff] }
  0x20   : > { %284 = vst.msk [vmem:[#allocation2 + $0x98] sm:$0xff] %vm264_vm0, %v2762_v28 }
  0x21   : > { %285 = vst.msk [vmem:[#allocation2 + $0xa0] sm:$0xff] %vm264_vm0, %v2762_v28 }
  0x22   : > { %286 = vst.msk [vmem:[#allocation2 + $0xa8] sm:$0xff] %vm264_vm0, %v2762_v28 }
  0x23   : > { %287 = vst.msk [vmem:[#allocation2 + $0xb0] sm:$0xff] %vm264_vm0, %v2762_v28 }
  0x24   : > { %288 = vst.msk [vmem:[#allocation2 + $0xb8] sm:$0xff] %vm264_vm0, %v2762_v28 }
  0x25   : > { %289 = vst.msk [vmem:[#allocation2 + $0xc0] sm:$0xff] %vm264_vm0, %v2762_v28 }
  0x26   : > { %290 = vst.msk [vmem:[#allocation2 + $0xc8] sm:$0xff] %vm264_vm0, %v2762_v28 }
  0x27   : > { %291 = vst.msk [vmem:[#allocation2 + $0xd0] sm:$0xff] %vm264_vm0, %v2762_v28 }
  0x28   : > { %292 = vst.msk [vmem:[#allocation2 + $0xd8] sm:$0xff] %vm264_vm0, %v2762_v28 }
  0x29   : > { %293 = vst.msk [vmem:[#allocation2 + $0xe0] sm:$0xff] %vm264_vm0, %v2762_v28 }
  0x2a   : > { %294 = vst.msk [vmem:[#allocation2 + $0xe8] sm:$0xff] %vm264_vm0, %v2762_v28 }
  0x2b   : > { %295 = vst.msk [vmem:[#allocation2 + $0xf0] sm:$0xff] %vm264_vm0, %v2762_v28 }
  0x2c   : > { %2565 = vmatmul.msk.bf16.gmra.mxu0 %vm264_vm0, %v2631_v8  ;;  %2581 = vmatmul.msk.bf16.gmra.mxu1 %vm264_vm0, %v2647_v9  ;;  %296 = vst.msk [vmem:[#allocation2 + $0xf8] sm:$0xff] %vm264_vm0, %v2762_v28  ;;  %v2640_v9 = vld [vmem:[%s2819_s28 + $0x50] sm:$0xff] }
  0x2d   : > { %2597 = vmatmul.msk.bf16.gmra.mxu2 %vm264_vm0, %v2663_v10  ;;  %2613 = vmatmul.msk.bf16.gmra.mxu3 %vm264_vm0, %v2679_v11  ;;  %297 = vst.msk [vmem:[#allocation2 + $0x100] sm:$0xff] %vm264_vm0, %v2762_v28  ;;  %v2656_v10 = vld [vmem:[%s2819_s28 + $0xd0] sm:$0xff] }
  0x2e   : > { %298 = vst.msk [vmem:[#allocation2 + $0x108] sm:$0xff] %vm264_vm0, %v2762_v28  ;;  %v2672_v11 = vld [vmem:[%s2819_s28 + $0x150] sm:$0xff] }
  0x2f   : > { %299 = vst.msk [vmem:[#allocation2 + $0x110] sm:$0xff] %vm264_vm0, %v2762_v28 }
  0x30   : > { %300 = vst.msk [vmem:[#allocation2 + $0x118] sm:$0xff] %vm264_vm0, %v2762_v28 }
  0x31   : > { %301 = vst.msk [vmem:[#allocation2 + $0x120] sm:$0xff] %vm264_vm0, %v2762_v28 }
  0x32   : > { %302 = vst.msk [vmem:[#allocation2 + $0x128] sm:$0xff] %vm264_vm0, %v2762_v28 }
  0x33   : > { %303 = vst.msk [vmem:[#allocation2 + $0x130] sm:$0xff] %vm264_vm0, %v2762_v28 }
  0x34   : > { %304 = vst.msk [vmem:[#allocation2 + $0x138] sm:$0xff] %vm264_vm0, %v2762_v28  ;;  %v425_v0 = vld [vmem:[#allocation2 + $0x100] sm:$0xff] }
  0x35   : > { %305 = vst.msk [vmem:[#allocation2 + $0x140] sm:$0xff] %vm264_vm0, %v2762_v28 }
  0x36   : > { %306 = vst.msk [vmem:[#allocation2 + $0x148] sm:$0xff] %vm264_vm0, %v2762_v28 }
  0x37   : > { %307 = vst.msk [vmem:[#allocation2 + $0x150] sm:$0xff] %vm264_vm0, %v2762_v28 }
  0x38   : > { %308 = vst.msk [vmem:[#allocation2 + $0x158] sm:$0xff] %vm264_vm0, %v2762_v28 }
  0x39   : > { %309 = vst.msk [vmem:[#allocation2 + $0x160] sm:$0xff] %vm264_vm0, %v2762_v28 }
  0x3a   : > { %310 = vst.msk [vmem:[#allocation2 + $0x168] sm:$0xff] %vm264_vm0, %v2762_v28 }
  0x3b   : > { %311 = vst.msk [vmem:[#allocation2 + $0x170] sm:$0xff] %vm264_vm0, %v2762_v28 }
  0x3c   : > { %2566 = vmatmul.msk.bf16.gmra.mxu0 %vm264_vm0, %v2632_v12  ;;  %2582 = vmatmul.msk.bf16.gmra.mxu1 %vm264_vm0, %v2648_v13  ;;  %312 = vst.msk [vmem:[#allocation2 + $0x178] sm:$0xff] %vm264_vm0, %v2762_v28  ;;  %v426_v13 = vld [vmem:[#allocation2 + $0x108] sm:$0xff] }
  0x3d   : > { %2598 = vmatmul.msk.bf16.gmra.mxu2 %vm264_vm0, %v2664_v14  ;;  %2614 = vmatmul.msk.bf16.gmra.mxu3 %vm264_vm0, %v2680_v15  ;;  %313 = vst.msk [vmem:[#allocation2 + $0x180] sm:$0xff] %vm264_vm0, %v2762_v28  ;;  %v2688_v14 = vld [vmem:[%s2819_s28 + $0x1d0] sm:$0xff] }
  0x3e   : > { %314 = vst.msk [vmem:[#allocation2 + $0x188] sm:$0xff] %vm264_vm0, %v2762_v28 }
  0x3f   : > { %315 = vst.msk [vmem:[#allocation2 + $0x190] sm:$0xff] %vm264_vm0, %v2762_v28 }
  0x40   : > { %316 = vst.msk [vmem:[#allocation2 + $0x198] sm:$0xff] %vm264_vm0, %v2762_v28 }
  0x41   : > { %317 = vst.msk [vmem:[#allocation2 + $0x1a0] sm:$0xff] %vm264_vm0, %v2762_v28 }
  0x42   : > { %318 = vst.msk [vmem:[#allocation2 + $0x1a8] sm:$0xff] %vm264_vm0, %v2762_v28 }
  0x43   : > { %319 = vst.msk [vmem:[#allocation2 + $0x1b0] sm:$0xff] %vm264_vm0, %v2762_v28 }
  0x44   : > { %320 = vst.msk [vmem:[#allocation2 + $0x1b8] sm:$0xff] %vm264_vm0, %v2762_v28 }
  0x45   : > { %321 = vst.msk [vmem:[#allocation2 + $0x1c0] sm:$0xff] %vm264_vm0, %v2762_v28 }
  0x46   : > { %322 = vst.msk [vmem:[#allocation2 + $0x1c8] sm:$0xff] %vm264_vm0, %v2762_v28 }
  0x47   : > { %323 = vst.msk [vmem:[#allocation2 + $0x1d0] sm:$0xff] %vm264_vm0, %v2762_v28 }
  0x48   : > { %324 = vst.msk [vmem:[#allocation2 + $0x1d8] sm:$0xff] %vm264_vm0, %v2762_v28 }
  0x49   : > { %325 = vst.msk [vmem:[#allocation2 + $0x1e0] sm:$0xff] %vm264_vm0, %v2762_v28 }
  0x4a   : > { %326 = vst.msk [vmem:[#allocation2 + $0x1e8] sm:$0xff] %vm264_vm0, %v2762_v28 }
  0x4b   : > { %327 = vst.msk [vmem:[#allocation2 + $0x1f0] sm:$0xff] %vm264_vm0, %v2762_v28 }
  0x4c   : > { %2567 = vmatmul.msk.bf16.gmra.mxu0 %vm264_vm0, %v2633_v16  ;;  %2583 = vmatmul.msk.bf16.gmra.mxu1 %vm264_vm0, %v2649_v17  ;;  %328 = vst.msk [vmem:[#allocation2 + $0x1f8] sm:$0xff] %vm264_vm0, %v2762_v28 }
  0x4d   : > { %2599 = vmatmul.msk.bf16.gmra.mxu2 %vm264_vm0, %v2665_v18  ;;  %2615 = vmatmul.msk.bf16.gmra.mxu3 %vm264_vm0, %v2681_v19  ;;  %329 = vst.msk [vmem:[#allocation2 + $0x200] sm:$0xff] %vm264_vm0, %v2762_v28 }
  0x4e   : > { %330 = vst.msk [vmem:[#allocation2 + $0x208] sm:$0xff] %vm264_vm0, %v2762_v28 }
  0x4f   : > { %331 = vst.msk [vmem:[#allocation2 + $0x210] sm:$0xff] %vm264_vm0, %v2762_v28 }
  0x50   : > { %332 = vst.msk [vmem:[#allocation2 + $0x218] sm:$0xff] %vm264_vm0, %v2762_v28 }
  0x51   : > { %333 = vst.msk [vmem:[#allocation2 + $0x220] sm:$0xff] %vm264_vm0, %v2762_v28 }
  0x52   : > { %334 = vst.msk [vmem:[#allocation2 + $0x228] sm:$0xff] %vm264_vm0, %v2762_v28 }
  0x53   : > { %335 = vst.msk [vmem:[#allocation2 + $0x230] sm:$0xff] %vm264_vm0, %v2762_v28 }
  0x54   : > { %336 = vst.msk [vmem:[#allocation2 + $0x238] sm:$0xff] %vm264_vm0, %v2762_v28  ;;  %v457_v3 = vld [vmem:[#allocation2 + $0x200] sm:$0xff] }
  0x55   : > { %337 = vst.msk [vmem:[#allocation2 + $0x240] sm:$0xff] %vm264_vm0, %v2762_v28  ;;  %v458_v16 = vld [vmem:[#allocation2 + $0x208] sm:$0xff] }
  0x56   : > { %338 = vst.msk [vmem:[#allocation2 + $0x248] sm:$0xff] %vm264_vm0, %v2762_v28 }
  0x57   : > { %339 = vst.msk [vmem:[#allocation2 + $0x250] sm:$0xff] %vm264_vm0, %v2762_v28 }
  0x58   : > { %340 = vst.msk [vmem:[#allocation2 + $0x258] sm:$0xff] %vm264_vm0, %v2762_v28 }
  0x59   : > { %341 = vst.msk [vmem:[#allocation2 + $0x260] sm:$0xff] %vm264_vm0, %v2762_v28 }
  0x5a   : > { %342 = vst.msk [vmem:[#allocation2 + $0x268] sm:$0xff] %vm264_vm0, %v2762_v28 }
  0x5b   : > { %343 = vst.msk [vmem:[#allocation2 + $0x270] sm:$0xff] %vm264_vm0, %v2762_v28 }
  0x5c   : > { %2568 = vmatmul.msk.bf16.gmra.mxu0 %vm264_vm0, %v2634_v20  ;;  %2584 = vmatmul.msk.bf16.gmra.mxu1 %vm264_vm0, %v2650_v21  ;;  %344 = vst.msk [vmem:[#allocation2 + $0x278] sm:$0xff] %vm264_vm0, %v2762_v28  ;;  %v395_v20 = vld [vmem:[#allocation2 + $0x10] sm:$0xff] }
  0x5d   : > { %2600 = vmatmul.msk.bf16.gmra.mxu2 %vm264_vm0, %v2666_v22  ;;  %2616 = vmatmul.msk.bf16.gmra.mxu3 %vm264_vm0, %v2682_v23  ;;  %345 = vst.msk [vmem:[#allocation2 + $0x280] sm:$0xff] %vm264_vm0, %v2762_v28  ;;  %v427_v22 = vld [vmem:[#allocation2 + $0x110] sm:$0xff] }
  0x5e   : > { %346 = vst.msk [vmem:[#allocation2 + $0x288] sm:$0xff] %vm264_vm0, %v2762_v28 }
  0x5f   : > { %347 = vst.msk [vmem:[#allocation2 + $0x290] sm:$0xff] %vm264_vm0, %v2762_v28 }
  0x60   : > { %348 = vst.msk [vmem:[#allocation2 + $0x298] sm:$0xff] %vm264_vm0, %v2762_v28 }
  0x61   : > { %349 = vst.msk [vmem:[#allocation2 + $0x2a0] sm:$0xff] %vm264_vm0, %v2762_v28 }
  0x62   : > { %350 = vst.msk [vmem:[#allocation2 + $0x2a8] sm:$0xff] %vm264_vm0, %v2762_v28 }
  0x63   : > { %351 = vst.msk [vmem:[#allocation2 + $0x2b0] sm:$0xff] %vm264_vm0, %v2762_v28 }
  0x64   : > { %352 = vst.msk [vmem:[#allocation2 + $0x2b8] sm:$0xff] %vm264_vm0, %v2762_v28 }
  0x65   : > { %353 = vst.msk [vmem:[#allocation2 + $0x2c0] sm:$0xff] %vm264_vm0, %v2762_v28 }
  0x66   : > { %354 = vst.msk [vmem:[#allocation2 + $0x2c8] sm:$0xff] %vm264_vm0, %v2762_v28 }
  0x67   : > { %355 = vst.msk [vmem:[#allocation2 + $0x2d0] sm:$0xff] %vm264_vm0, %v2762_v28 }
  0x68   : > { %356 = vst.msk [vmem:[#allocation2 + $0x2d8] sm:$0xff] %vm264_vm0, %v2762_v28 }
  0x69   : > { %357 = vst.msk [vmem:[#allocation2 + $0x2e0] sm:$0xff] %vm264_vm0, %v2762_v28 }
  0x6a   : > { %358 = vst.msk [vmem:[#allocation2 + $0x2e8] sm:$0xff] %vm264_vm0, %v2762_v28 }
  0x6b   : > { %359 = vst.msk [vmem:[#allocation2 + $0x2f0] sm:$0xff] %vm264_vm0, %v2762_v28 }
  0x6c   : > { %2569 = vmatmul.msk.bf16.gmra.mxu0 %vm264_vm0, %v2635_v24  ;;  %2585 = vmatmul.msk.bf16.gmra.mxu1 %vm264_vm0, %v2651_v25  ;;  %360 = vst.msk [vmem:[#allocation2 + $0x2f8] sm:$0xff] %vm264_vm0, %v2762_v28 }
  0x6d   : > { %2601 = vmatmul.msk.bf16.gmra.mxu2 %vm264_vm0, %v2667_v26  ;;  %2617 = vmatmul.msk.bf16.gmra.mxu3 %vm264_vm0, %v2683_v27  ;;  %361 = vst.msk [vmem:[#allocation2 + $0x300] sm:$0xff] %vm264_vm0, %v2762_v28  ;;  %v459_v26 = vld [vmem:[#allocation2 + $0x210] sm:$0xff] }
  0x6e   : > { %362 = vst.msk [vmem:[#allocation2 + $0x308] sm:$0xff] %vm264_vm0, %v2762_v28 }
  0x6f   : > { %363 = vst.msk [vmem:[#allocation2 + $0x310] sm:$0xff] %vm264_vm0, %v2762_v28 }
  0x70   : > { %364 = vst.msk [vmem:[#allocation2 + $0x318] sm:$0xff] %vm264_vm0, %v2762_v28 }
  0x71   : > { %365 = vst.msk [vmem:[#allocation2 + $0x320] sm:$0xff] %vm264_vm0, %v2762_v28 }
  0x72   : > { %366 = vst.msk [vmem:[#allocation2 + $0x328] sm:$0xff] %vm264_vm0, %v2762_v28 }
  0x73   : > { %367 = vst.msk [vmem:[#allocation2 + $0x330] sm:$0xff] %vm264_vm0, %v2762_v28 }
  0x74   : > { %368 = vst.msk [vmem:[#allocation2 + $0x338] sm:$0xff] %vm264_vm0, %v2762_v28  ;;  %v489_v4 = vld [vmem:[#allocation2 + $0x300] sm:$0xff] }
  0x75   : > { %369 = vst.msk [vmem:[#allocation2 + $0x340] sm:$0xff] %vm264_vm0, %v2762_v28  ;;  %v490_v18 = vld [vmem:[#allocation2 + $0x308] sm:$0xff] }
  0x76   : > { %370 = vst.msk [vmem:[#allocation2 + $0x348] sm:$0xff] %vm264_vm0, %v2762_v28 }
  0x77   : > { %371 = vst.msk [vmem:[#allocation2 + $0x350] sm:$0xff] %vm264_vm0, %v2762_v28 }
  0x78   : > { %372 = vst.msk [vmem:[#allocation2 + $0x358] sm:$0xff] %vm264_vm0, %v2762_v28 }
  0x79   : > { %373 = vst.msk [vmem:[#allocation2 + $0x360] sm:$0xff] %vm264_vm0, %v2762_v28 }
  0x7a   : > { %374 = vst.msk [vmem:[#allocation2 + $0x368] sm:$0xff] %vm264_vm0, %v2762_v28 }
  0x7b   : > { %375 = vst.msk [vmem:[#allocation2 + $0x370] sm:$0xff] %vm264_vm0, %v2762_v28 }
  0x7c   : > { %2570 = vmatmul.msk.bf16.gmra.mxu0 %vm264_vm0, %v2636_v29  ;;  %2586 = vmatmul.msk.bf16.gmra.mxu1 %vm264_vm0, %v2652_v30  ;;  %376 = vst.msk [vmem:[#allocation2 + $0x378] sm:$0xff] %vm264_vm0, %v2762_v28 }
  0x7d   : > { %2602 = vmatmul.msk.bf16.gmra.mxu2 %vm264_vm0, %v2668_v31  ;;  %2618 = vmatmul.msk.bf16.gmra.mxu3 %vm264_vm0, %v2684_v32  ;;  %377 = vst.msk [vmem:[#allocation2 + $0x380] sm:$0xff] %vm264_vm0, %v2762_v28 }
  0x7e   : > { %378 = vst.msk [vmem:[#allocation2 + $0x388] sm:$0xff] %vm264_vm0, %v2762_v28 }
  0x7f   : > { %379 = vst.msk [vmem:[#allocation2 + $0x390] sm:$0xff] %vm264_vm0, %v2762_v28 }
  0x80   : > { %380 = vst.msk [vmem:[#allocation2 + $0x398] sm:$0xff] %vm264_vm0, %v2762_v28 }
  0x81   : > { %381 = vst.msk [vmem:[#allocation2 + $0x3a0] sm:$0xff] %vm264_vm0, %v2762_v28 }
  0x82   : > { %382 = vst.msk [vmem:[#allocation2 + $0x3a8] sm:$0xff] %vm264_vm0, %v2762_v28 }
  0x83   : > { %383 = vst.msk [vmem:[#allocation2 + $0x3b0] sm:$0xff] %vm264_vm0, %v2762_v28 }
  0x84   : > { %384 = vst.msk [vmem:[#allocation2 + $0x3b8] sm:$0xff] %vm264_vm0, %v2762_v28 }
  0x85   : > { %385 = vst.msk [vmem:[#allocation2 + $0x3c0] sm:$0xff] %vm264_vm0, %v2762_v28 }
  0x86   : > { %386 = vst.msk [vmem:[#allocation2 + $0x3c8] sm:$0xff] %vm264_vm0, %v2762_v28 }
  0x87   : > { %387 = vst.msk [vmem:[#allocation2 + $0x3d0] sm:$0xff] %vm264_vm0, %v2762_v28 }
  0x88   : > { %388 = vst.msk [vmem:[#allocation2 + $0x3d8] sm:$0xff] %vm264_vm0, %v2762_v28 }
  0x89   : > { %389 = vst.msk [vmem:[#allocation2 + $0x3e0] sm:$0xff] %vm264_vm0, %v2762_v28 }
  0x8a   : > { %390 = vst.msk [vmem:[#allocation2 + $0x3e8] sm:$0xff] %vm264_vm0, %v2762_v28 }
  0x8b   : > { %391 = vst.msk [vmem:[#allocation2 + $0x3f0] sm:$0xff] %vm264_vm0, %v2762_v28 }
  0x8c   : > { %2571 = vmatmul.msk.bf16.gmra.mxu0 %vm264_vm0, %v2637_v33  ;;  %2587 = vmatmul.msk.bf16.gmra.mxu1 %vm264_vm0, %v2653_v34  ;;  %392 = vst.msk [vmem:[#allocation2 + $0x3f8] sm:$0xff] %vm264_vm0, %v2762_v28 }
  0x8d   : > { %2603 = vmatmul.msk.bf16.gmra.mxu2 %vm264_vm0, %v2669_v35  ;;  %2619 = vmatmul.msk.bf16.gmra.mxu3 %vm264_vm0, %v2685_v36 }
  0x99   : > { %v1203_v38 = vpop.f32.mrf.mxu0  ;;  %v3076_v43 = vpop.f32.mrf.mxu1 }
  0x9a   : > { %v1523_v39 = vadd.f32 %v1203_v38, %v393_v37  ;;  %v1555_v8 = vadd.f32 %v3076_v43, %v425_v0 }
  0x9c   : > { %1651 = vst.msk [vmem:[#allocation2] sm:$0xff] %vm264_vm0, %v1523_v39  ;;  %2572 = vmatmul.msk.bf16.gmra.mxu0 %vm264_vm0, %v2638_v44  ;;  %2588 = vmatmul.msk.bf16.gmra.mxu1 %vm264_vm0, %v2654_v45 }
  0x9d   : > { %2604 = vmatmul.msk.bf16.gmra.mxu2 %vm264_vm0, %v2670_v46  ;;  %2620 = vmatmul.msk.bf16.gmra.mxu3 %vm264_vm0, %v2686_v47  ;;  %1683 = vst.msk [vmem:[#allocation2 + $0x100] sm:$0xff] %vm264_vm0, %v1555_v8  ;;  %v491_v46 = vld [vmem:[#allocation2 + $0x310] sm:$0xff] }
  0xa0   : > { %v3098_v48 = vpop.f32.mrf.mxu2  ;;  %v3102_v49 = vpop.f32.mrf.mxu3 }
  0xa1   : > { %v3110_v50 = vpop.f32.mrf.mxu0  ;;  %v3112_v51 = vpop.f32.mrf.mxu1  ;;  %v1587_v12 = vadd.f32 %v3098_v48, %v457_v3  ;;  %v1619_v15 = vadd.f32 %v3102_v49, %v489_v4  ;;  %v396_v49 = vld [vmem:[#allocation2 + $0x18] sm:$0xff] }
  0xa2   : > { %v1524_v17 = vadd.f32 %v3110_v50, %v394_v5  ;;  %v1556_v19 = vadd.f32 %v3112_v51, %v426_v13  ;;  %v428_v50 = vld [vmem:[#allocation2 + $0x118] sm:$0xff]  ;;  %v429_v13 = vld [vmem:[#allocation2 + $0x120] sm:$0xff] }
  0xa3   : > { %v1782_v41 = vld [vmem:[#allocation2] sm:$0xff]  ;;  %1715 = vst.msk [vmem:[#allocation2 + $0x200] sm:$0xff] %vm264_vm0, %v1587_v12  ;;  %v460_v5 = vld [vmem:[#allocation2 + $0x218] sm:$0xff] }
  0xa4   : > { %v1914_v42 = vadd.f32 %v2988_v40, %v1782_v41  ;;  %1747 = vst.msk [vmem:[#allocation2 + $0x300] sm:$0xff] %vm264_vm0, %v1619_v15  ;;  %v1814_v32 = vld [vmem:[#allocation2 + $0x100] sm:$0xff] }
  0xa5   : > { %1652 = vst.msk [vmem:[#allocation2 + $0x8] sm:$0xff] %vm264_vm0, %v1524_v17  ;;  %v1946_v33 = vadd.f32 %v2988_v40, %v1814_v32 }
  0xa6   : > { %2042 = vst.msk [vmem:[%s2999_s7] sm:$0xff] %vm264_vm0, %v1914_v42 }
  0xa7   : > { %1684 = vst.msk [vmem:[#allocation2 + $0x108] sm:$0xff] %vm264_vm0, %v1556_v19 }
  0xa8   : > { %v3126_v52 = vpop.f32.mrf.mxu2  ;;  %v3128_v53 = vpop.f32.mrf.mxu3  ;;  %2074 = vst.msk [vmem:[%s2999_s7 + $0x100] sm:$0xff] %vm264_vm0, %v1946_v33  ;;  %v2642_v33 = vld [vmem:[%s2819_s28 + $0x60] sm:$0xff] }
  0xa9   : > { %v3134_v54 = vpop.f32.mrf.mxu0  ;;  %v3136_v55 = vpop.f32.mrf.mxu1  ;;  %v1588_v21 = vadd.f32 %v3126_v52, %v458_v16  ;;  %v1620_v25 = vadd.f32 %v3128_v53, %v490_v18  ;;  %v461_v16 = vld [vmem:[#allocation2 + $0x220] sm:$0xff] }
  0xaa   : > { %v1525_v27 = vadd.f32 %v3134_v54, %v395_v20  ;;  %v1557_v30 = vadd.f32 %v3136_v55, %v427_v22  ;;  %v1846_v34 = vld [vmem:[#allocation2 + $0x200] sm:$0xff]  ;;  %v2641_v55 = vld [vmem:[%s2819_s28 + $0x58] sm:$0xff]  ;;  %v398_v20 = vld [vmem:[#allocation2 + $0x28] sm:$0xff] }
  0xab   : > { %1716 = vst.msk [vmem:[#allocation2 + $0x208] sm:$0xff] %vm264_vm0, %v1588_v21  ;;  %v1978_v35 = vadd.f32 %v2988_v40, %v1846_v34  ;;  %v1878_v36 = vld [vmem:[#allocation2 + $0x300] sm:$0xff] }
  0xac   : > { %2573 = vmatmul.msk.bf16.gmra.mxu0 %vm264_vm0, %v2639_v56  ;;  %2589 = vmatmul.msk.bf16.gmra.mxu1 %vm264_vm0, %v2655_v57  ;;  %1748 = vst.msk [vmem:[#allocation2 + $0x308] sm:$0xff] %vm264_vm0, %v1620_v25  ;;  %v2010_v37 = vadd.f32 %v2988_v40, %v1878_v36  ;;  %v1783_v38 = vld [vmem:[#allocation2 + $0x8] sm:$0xff]  ;;  %v2657_v56 = vld [vmem:[%s2819_s28 + $0xd8] sm:$0xff]  ;;  %v2658_v34 = vld [vmem:[%s2819_s28 + $0xe0] sm:$0xff] }
  0xad   : > { %2605 = vmatmul.msk.bf16.gmra.mxu2 %vm264_vm0, %v2671_v58  ;;  %2621 = vmatmul.msk.bf16.gmra.mxu3 %vm264_vm0, %v2687_v59  ;;  %1653 = vst.msk [vmem:[#allocation2 + $0x10] sm:$0xff] %vm264_vm0, %v1525_v27  ;;  %v1915_v39 = vadd.f32 %v2988_v40, %v1783_v38  ;;  %v2673_v59 = vld [vmem:[%s2819_s28 + $0x158] sm:$0xff]  ;;  %v2690_v38 = vld [vmem:[%s2819_s28 + $0x1e0] sm:$0xff] }
  0xae   : > { %1685 = vst.msk [vmem:[#allocation2 + $0x110] sm:$0xff] %vm264_vm0, %v1557_v30  ;;  %v1815_v41 = vld [vmem:[#allocation2 + $0x108] sm:$0xff] }
  0xaf   : > { %2106 = vst.msk [vmem:[%s2999_s7 + $0x200] sm:$0xff] %vm264_vm0, %v1978_v35  ;;  %v1947_v44 = vadd.f32 %v2988_v40, %v1815_v41 }
  0xb0   : > { %v1368_v60 = vpop.f32.mrf.mxu2  ;;  %v3158_v61 = vpop.f32.mrf.mxu3  ;;  %2138 = vst.msk [vmem:[%s2999_s7 + $0x300] sm:$0xff] %vm264_vm0, %v2010_v37  ;;  %v2674_v37 = vld [vmem:[%s2819_s28 + $0x160] sm:$0xff] }
  0xb1   : > { %v3168_v62 = vpop.f32.mrf.mxu0  ;;  %v3170_v63 = vpop.f32.mrf.mxu1  ;;  %v1589_v31 = vadd.f32 %v1368_v60, %v459_v26  ;;  %2043 = vst.msk [vmem:[%s2999_s7 + $0x8] sm:$0xff] %vm264_vm0, %v1915_v39  ;;  %v2689_v60 = vld [vmem:[%s2819_s28 + $0x1d8] sm:$0xff]  ;;  %v1621_v4 = vadd.f32 %v3158_v61, %v491_v46  ;;  %v430_v46 = vld [vmem:[#allocation2 + $0x128] sm:$0xff] }
  0xb2   : > { %v1847_v45 = vld [vmem:[#allocation2 + $0x208] sm:$0xff]  ;;  %2075 = vst.msk [vmem:[%s2999_s7 + $0x108] sm:$0xff] %vm264_vm0, %v1947_v44  ;;  %v1558_v61 = vadd.f32 %v3170_v63, %v428_v50  ;;  %v493_v63 = vld [vmem:[#allocation2 + $0x320] sm:$0xff] }
  0xb3   : > { %1717 = vst.msk [vmem:[#allocation2 + $0x210] sm:$0xff] %vm264_vm0, %v1589_v31  ;;  %v1979_v47 = vadd.f32 %v2988_v40, %v1847_v45  ;;  %v1879_v48 = vld [vmem:[#allocation2 + $0x308] sm:$0xff] }
  0xb4   : > { %v2011_v53 = vadd.f32 %v2988_v40, %v1879_v48  ;;  %v1784_v54 = vld [vmem:[#allocation2 + $0x10] sm:$0xff]  ;;  %1749 = vst.msk [vmem:[#allocation2 + $0x310] sm:$0xff] %vm264_vm0, %v1621_v4 }
  0xb5   : > { %2107 = vst.msk [vmem:[%s2999_s7 + $0x208] sm:$0xff] %vm264_vm0, %v1979_v47  ;;  %v1916_v57 = vadd.f32 %v2988_v40, %v1784_v54  ;;  %v1816_v58 = vld [vmem:[#allocation2 + $0x110] sm:$0xff]  ;;  %v494_v54 = vld [vmem:[#allocation2 + $0x328] sm:$0xff] }
  0xb6   : > { %2139 = vst.msk [vmem:[%s2999_s7 + $0x308] sm:$0xff] %vm264_vm0, %v2011_v53  ;;  %v1948_v0 = vadd.f32 %v2988_v40, %v1816_v58  ;;  %v431_v4 = vld [vmem:[#allocation2 + $0x130] sm:$0xff] }
  0xb7   : > { %2044 = vst.msk [vmem:[%s2999_s7 + $0x10] sm:$0xff] %vm264_vm0, %v1916_v57 }
  0xb8   : > { %v3184_v1 = vpop.f32.mrf.mxu2  ;;  %v3186_v2 = vpop.f32.mrf.mxu3  ;;  %2076 = vst.msk [vmem:[%s2999_s7 + $0x110] sm:$0xff] %vm264_vm0, %v1948_v0 }
  0xb9   : > { %v3192_v6 = vpop.f32.mrf.mxu0  ;;  %v3194_v7 = vpop.f32.mrf.mxu1  ;;  %v1590_v12 = vadd.f32 %v3184_v1, %v460_v5  ;;  %1686 = vst.msk [vmem:[#allocation2 + $0x118] sm:$0xff] %vm264_vm0, %v1558_v61  ;;  %v495_v61 = vld [vmem:[#allocation2 + $0x330] sm:$0xff] }
  0xba   : > { %v1848_v3 = vld [vmem:[#allocation2 + $0x210] sm:$0xff]  ;;  %v1559_v1 = vadd.f32 %v3194_v7, %v429_v13  ;;  %v432_v13 = vld [vmem:[#allocation2 + $0x138] sm:$0xff] }
  0xbb   : > { %v1980_v8 = vadd.f32 %v2988_v40, %v1848_v3  ;;  %1718 = vst.msk [vmem:[#allocation2 + $0x218] sm:$0xff] %vm264_vm0, %v1590_v12  ;;  %v1880_v22 = vld [vmem:[#allocation2 + $0x310] sm:$0xff] }
  0xbc   : > { %2574 = vmatmul.msk.bf16.gmra.mxu0 %vm264_vm0, %v2640_v9  ;;  %2590 = vmatmul.msk.bf16.gmra.mxu1 %vm264_vm0, %v2656_v10  ;;  %v1526_v9 = vadd.f32 %v3168_v62, %v396_v49  ;;  %v492_v10 = vld [vmem:[#allocation2 + $0x318] sm:$0xff]  ;;  %1687 = vst.msk [vmem:[#allocation2 + $0x120] sm:$0xff] %vm264_vm0, %v1559_v1  ;;  %v2012_v25 = vadd.f32 %v2988_v40, %v1880_v22  ;;  %v462_v49 = vld [vmem:[#allocation2 + $0x228] sm:$0xff] }
  0xbd   : > { %2606 = vmatmul.msk.bf16.gmra.mxu2 %vm264_vm0, %v2672_v11  ;;  %2622 = vmatmul.msk.bf16.gmra.mxu3 %vm264_vm0, %v2688_v14  ;;  %v397_v11 = vld [vmem:[#allocation2 + $0x20] sm:$0xff]  ;;  %2108 = vst.msk [vmem:[%s2999_s7 + $0x210] sm:$0xff] %vm264_vm0, %v1980_v8  ;;  %v1622_v62 = vadd.f32 %v3186_v2, %v492_v10  ;;  %v463_v10 = vld [vmem:[#allocation2 + $0x230] sm:$0xff]  ;;  %v2659_v1 = vld [vmem:[%s2819_s28 + $0xe8] sm:$0xff] }
  0xbe   : > { %1654 = vst.msk [vmem:[#allocation2 + $0x18] sm:$0xff] %vm264_vm0, %v1526_v9  ;;  %v1527_v17 = vadd.f32 %v3192_v6, %v397_v11 }
  0xbf   : > { %1750 = vst.msk [vmem:[#allocation2 + $0x318] sm:$0xff] %vm264_vm0, %v1622_v62  ;;  %v464_v62 = vld [vmem:[#allocation2 + $0x238] sm:$0xff] }
  0xc0   : > { %v3220_v23 = vpop.f32.mrf.mxu2  ;;  %v3222_v24 = vpop.f32.mrf.mxu3  ;;  %1655 = vst.msk [vmem:[#allocation2 + $0x20] sm:$0xff] %vm264_vm0, %v1527_v17  ;;  %v1817_v27 = vld [vmem:[#allocation2 + $0x118] sm:$0xff] }
  0xc1   : > { %v3228_v28 = vpop.f32.mrf.mxu0  ;;  %v3230_v29 = vpop.f32.mrf.mxu1  ;;  %v1591_v21 = vadd.f32 %v3220_v23, %v461_v16  ;;  %v1623_v2 = vadd.f32 %v3222_v24, %v493_v63  ;;  %2140 = vst.msk [vmem:[%s2999_s7 + $0x310] sm:$0xff] %vm264_vm0, %v2012_v25  ;;  %v1949_v31 = vadd.f32 %v2988_v40, %v1817_v27 }
  0xc2   : > { %v1528_v6 = vadd.f32 %v3228_v28, %v398_v20  ;;  %v1849_v32 = vld [vmem:[#allocation2 + $0x218] sm:$0xff] }
  0xc3   : > { %1719 = vst.msk [vmem:[#allocation2 + $0x220] sm:$0xff] %vm264_vm0, %v1591_v21  ;;  %v1981_v35 = vadd.f32 %v2988_v40, %v1849_v32  ;;  %v1818_v45 = vld [vmem:[#allocation2 + $0x120] sm:$0xff]  ;;  %v2675_v21 = vld [vmem:[%s2819_s28 + $0x168] sm:$0xff] }
  0xc4   : > { %1751 = vst.msk [vmem:[#allocation2 + $0x320] sm:$0xff] %vm264_vm0, %v1623_v2  ;;  %v1950_v47 = vadd.f32 %v2988_v40, %v1818_v45  ;;  %v401_v45 = vld [vmem:[#allocation2 + $0x40] sm:$0xff] }
  0xc5   : > { %v1785_v24 = vld [vmem:[#allocation2 + $0x18] sm:$0xff]  ;;  %1656 = vst.msk [vmem:[#allocation2 + $0x28] sm:$0xff] %vm264_vm0, %v1528_v6  ;;  %v2691_v6 = vld [vmem:[%s2819_s28 + $0x1e8] sm:$0xff] }
  0xc6   : > { %v1917_v26 = vadd.f32 %v2988_v40, %v1785_v24  ;;  %v1881_v36 = vld [vmem:[#allocation2 + $0x318] sm:$0xff]  ;;  %2077 = vst.msk [vmem:[%s2999_s7 + $0x118] sm:$0xff] %vm264_vm0, %v1949_v31 }
  0xc7   : > { %v2013_v39 = vadd.f32 %v2988_v40, %v1881_v36  ;;  %v1786_v41 = vld [vmem:[#allocation2 + $0x20] sm:$0xff]  ;;  %2109 = vst.msk [vmem:[%s2999_s7 + $0x218] sm:$0xff] %vm264_vm0, %v1981_v35 }
  0xc8   : > { %v3247_v42 = vpop.f32.mrf.mxu2  ;;  %v3249_v43 = vpop.f32.mrf.mxu3  ;;  %2045 = vst.msk [vmem:[%s2999_s7 + $0x18] sm:$0xff] %vm264_vm0, %v1917_v26  ;;  %v1918_v44 = vadd.f32 %v2988_v40, %v1786_v41 }
  0xc9   : > { %v3257_v51 = vpop.f32.mrf.mxu0  ;;  %v3259_v52 = vpop.f32.mrf.mxu1  ;;  %2141 = vst.msk [vmem:[%s2999_s7 + $0x318] sm:$0xff] %vm264_vm0, %v2013_v39  ;;  %v1592_v3 = vadd.f32 %v3247_v42, %v462_v49  ;;  %v1624_v9 = vadd.f32 %v3249_v43, %v494_v54  ;;  %v400_v42 = vld [vmem:[#allocation2 + $0x38] sm:$0xff]  ;;  %v465_v54 = vld [vmem:[#allocation2 + $0x240] sm:$0xff] }
  0xca   : > { %v1850_v48 = vld [vmem:[#allocation2 + $0x220] sm:$0xff]  ;;  %2046 = vst.msk [vmem:[%s2999_s7 + $0x20] sm:$0xff] %vm264_vm0, %v1918_v44  ;;  %v1561_v11 = vadd.f32 %v3259_v52, %v431_v4 }
  0xcb   : > { %v1982_v50 = vadd.f32 %v2988_v40, %v1850_v48  ;;  %v1882_v53 = vld [vmem:[#allocation2 + $0x320] sm:$0xff]  ;;  %2078 = vst.msk [vmem:[%s2999_s7 + $0x120] sm:$0xff] %vm264_vm0, %v1950_v47 }
  0xcc   : > { %2575 = vmatmul.msk.bf16.gmra.mxu0 %vm264_vm0, %v2641_v55  ;;  %2591 = vmatmul.msk.bf16.gmra.mxu1 %vm264_vm0, %v2657_v56  ;;  %v2014_v57 = vadd.f32 %v2988_v40, %v1882_v53  ;;  %v1787_v58 = vld [vmem:[#allocation2 + $0x28] sm:$0xff]  ;;  %1720 = vst.msk [vmem:[#allocation2 + $0x228] sm:$0xff] %vm264_vm0, %v1592_v3  ;;  %v433_v48 = vld [vmem:[#allocation2 + $0x140] sm:$0xff] }
  0xcd   : > { %2607 = vmatmul.msk.bf16.gmra.mxu2 %vm264_vm0, %v2673_v59  ;;  %2623 = vmatmul.msk.bf16.gmra.mxu3 %vm264_vm0, %v2689_v60  ;;  %v1560_v59 = vadd.f32 %v3230_v29, %v430_v46  ;;  %v399_v60 = vld [vmem:[#allocation2 + $0x30] sm:$0xff]  ;;  %2110 = vst.msk [vmem:[%s2999_s7 + $0x220] sm:$0xff] %vm264_vm0, %v1982_v50  ;;  %v1919_v0 = vadd.f32 %v2988_v40, %v1787_v58 }
  0xce   : > { %2142 = vst.msk [vmem:[%s2999_s7 + $0x320] sm:$0xff] %vm264_vm0, %v2014_v57  ;;  %v1529_v29 = vadd.f32 %v3257_v51, %v399_v60 }
  0xcf   : > { %2047 = vst.msk [vmem:[%s2999_s7 + $0x28] sm:$0xff] %vm264_vm0, %v1919_v0  ;;  %v402_v0 = vld [vmem:[#allocation2 + $0x48] sm:$0xff] }
  0xd0   : > { %v3289_v14 = vpop.f32.mrf.mxu2  ;;  %v3291_v15 = vpop.f32.mrf.mxu3  ;;  %1688 = vst.msk [vmem:[#allocation2 + $0x128] sm:$0xff] %vm264_vm0, %v1560_v59  ;;  %v497_v59 = vld [vmem:[#allocation2 + $0x340] sm:$0xff] }
  0xd1   : > { %v3297_v18 = vpop.f32.mrf.mxu0  ;;  %v3299_v19 = vpop.f32.mrf.mxu1  ;;  %v1593_v12 = vadd.f32 %v3289_v14, %v463_v10  ;;  %1752 = vst.msk [vmem:[#allocation2 + $0x328] sm:$0xff] %vm264_vm0, %v1624_v9  ;;  %v1625_v43 = vadd.f32 %v3291_v15, %v495_v61  ;;  %v466_v10 = vld [vmem:[#allocation2 + $0x248] sm:$0xff]  ;;  %v403_v61 = vld [vmem:[#allocation2 + $0x50] sm:$0xff] }
  0xd2   : > { %1657 = vst.msk [vmem:[#allocation2 + $0x30] sm:$0xff] %vm264_vm0, %v1529_v29  ;;  %v1530_v51 = vadd.f32 %v3297_v18, %v400_v42  ;;  %v1562_v14 = vadd.f32 %v3299_v19, %v432_v13  ;;  %v2643_v18 = vld [vmem:[%s2819_s28 + $0x68] sm:$0xff]  ;;  %v2660_v13 = vld [vmem:[%s2819_s28 + $0xf0] sm:$0xff] }
  0xd3   : > { %1689 = vst.msk [vmem:[#allocation2 + $0x130] sm:$0xff] %vm264_vm0, %v1561_v11  ;;  %v1851_v2 = vld [vmem:[#allocation2 + $0x228] sm:$0xff] }
  0xd4   : > { %1721 = vst.msk [vmem:[#allocation2 + $0x230] sm:$0xff] %vm264_vm0, %v1593_v12  ;;  %v1983_v22 = vadd.f32 %v2988_v40, %v1851_v2  ;;  %v498_v29 = vld [vmem:[#allocation2 + $0x348] sm:$0xff]  ;;  %v2644_v12 = vld [vmem:[%s2819_s28 + $0x70] sm:$0xff] }
  0xd5   : > { %1753 = vst.msk [vmem:[#allocation2 + $0x330] sm:$0xff] %vm264_vm0, %v1625_v43  ;;  %v2676_v43 = vld [vmem:[%s2819_s28 + $0x170] sm:$0xff] }
  0xd6   : > { %1658 = vst.msk [vmem:[#allocation2 + $0x38] sm:$0xff] %vm264_vm0, %v1530_v51 }
  0xd7   : > { %v1819_v20 = vld [vmem:[#allocation2 + $0x128] sm:$0xff]  ;;  %1690 = vst.msk [vmem:[#allocation2 + $0x138] sm:$0xff] %vm264_vm0, %v1562_v14 }
  0xd8   : > { %v3311_v7 = vpop.f32.mrf.mxu2  ;;  %v3313_v23 = vpop.f32.mrf.mxu3  ;;  %v1951_v19 = vadd.f32 %v2988_v40, %v1819_v20  ;;  %2111 = vst.msk [vmem:[%s2999_s7 + $0x228] sm:$0xff] %vm264_vm0, %v1983_v22 }
  0xd9   : > { %v3319_v28 = vpop.f32.mrf.mxu0  ;;  %v3321_v30 = vpop.f32.mrf.mxu1  ;;  %v1594_v17 = vadd.f32 %v3311_v7, %v464_v62  ;;  %v1883_v7 = vld [vmem:[#allocation2 + $0x328] sm:$0xff]  ;;  %v1788_v24 = vld [vmem:[#allocation2 + $0x30] sm:$0xff] }
  0xda   : > { %2079 = vst.msk [vmem:[%s2999_s7 + $0x128] sm:$0xff] %vm264_vm0, %v1951_v19  ;;  %v2015_v25 = vadd.f32 %v2988_v40, %v1883_v7  ;;  %v1920_v26 = vadd.f32 %v2988_v40, %v1788_v24  ;;  %v1820_v27 = vld [vmem:[#allocation2 + $0x130] sm:$0xff]  ;;  %v1531_v58 = vadd.f32 %v3319_v28, %v401_v45  ;;  %v1563_v60 = vadd.f32 %v3321_v30, %v433_v48  ;;  %v404_v48 = vld [vmem:[#allocation2 + $0x58] sm:$0xff] }
  0xdb   : > { %1722 = vst.msk [vmem:[#allocation2 + $0x238] sm:$0xff] %vm264_vm0, %v1594_v17  ;;  %v2692_v62 = vld [vmem:[%s2819_s28 + $0x1f0] sm:$0xff] }
  0xdc   : > { %2576 = vmatmul.msk.bf16.gmra.mxu0 %vm264_vm0, %v2642_v33  ;;  %2592 = vmatmul.msk.bf16.gmra.mxu1 %vm264_vm0, %v2658_v34  ;;  %2143 = vst.msk [vmem:[%s2999_s7 + $0x328] sm:$0xff] %vm264_vm0, %v2015_v25  ;;  %v1952_v33 = vadd.f32 %v2988_v40, %v1820_v27  ;;  %v1852_v34 = vld [vmem:[#allocation2 + $0x230] sm:$0xff] }
  0xdd   : > { %2608 = vmatmul.msk.bf16.gmra.mxu2 %vm264_vm0, %v2674_v37  ;;  %2624 = vmatmul.msk.bf16.gmra.mxu3 %vm264_vm0, %v2690_v38  ;;  %2048 = vst.msk [vmem:[%s2999_s7 + $0x30] sm:$0xff] %vm264_vm0, %v1920_v26  ;;  %v1984_v35 = vadd.f32 %v2988_v40, %v1852_v34  ;;  %v1884_v36 = vld [vmem:[#allocation2 + $0x330] sm:$0xff]  ;;  %v496_v37 = vld [vmem:[#allocation2 + $0x338] sm:$0xff] }
  0xde   : > { %2080 = vst.msk [vmem:[%s2999_s7 + $0x130] sm:$0xff] %vm264_vm0, %v1952_v33  ;;  %v2016_v41 = vadd.f32 %v2988_v40, %v1884_v36  ;;  %v1789_v44 = vld [vmem:[#allocation2 + $0x38] sm:$0xff]  ;;  %v1626_v53 = vadd.f32 %v3313_v23, %v496_v37  ;;  %v434_v23 = vld [vmem:[#allocation2 + $0x148] sm:$0xff]  ;;  %v435_v26 = vld [vmem:[#allocation2 + $0x150] sm:$0xff] }
  0xdf   : > { %2112 = vst.msk [vmem:[%s2999_s7 + $0x230] sm:$0xff] %vm264_vm0, %v1984_v35  ;;  %v1921_v46 = vadd.f32 %v2988_v40, %v1789_v44  ;;  %v1821_v47 = vld [vmem:[#allocation2 + $0x138] sm:$0xff]  ;;  %v467_v34 = vld [vmem:[#allocation2 + $0x250] sm:$0xff] }
  0xe0   : > { %v3349_v55 = vpop.f32.mrf.mxu2  ;;  %v3351_v56 = vpop.f32.mrf.mxu3  ;;  %2144 = vst.msk [vmem:[%s2999_s7 + $0x330] sm:$0xff] %vm264_vm0, %v2016_v41  ;;  %v1953_v49 = vadd.f32 %v2988_v40, %v1821_v47  ;;  %v499_v37 = vld [vmem:[#allocation2 + $0x350] sm:$0xff] }
  0xe1   : > { %v3361_v5 = vpop.f32.mrf.mxu0  ;;  %v3363_v8 = vpop.f32.mrf.mxu1  ;;  %2049 = vst.msk [vmem:[%s2999_s7 + $0x38] sm:$0xff] %vm264_vm0, %v1921_v46  ;;  %v1595_v3 = vadd.f32 %v3349_v55, %v465_v54  ;;  %v1627_v28 = vadd.f32 %v3351_v56, %v497_v59  ;;  %v468_v54 = vld [vmem:[#allocation2 + $0x258] sm:$0xff] }
  0xe2   : > { %v1853_v50 = vld [vmem:[#allocation2 + $0x238] sm:$0xff]  ;;  %2081 = vst.msk [vmem:[%s2999_s7 + $0x138] sm:$0xff] %vm264_vm0, %v1953_v49  ;;  %v1532_v30 = vadd.f32 %v3361_v5, %v402_v0  ;;  %v1564_v42 = vadd.f32 %v3363_v8, %v434_v23 }
  0xe3   : > { %v1985_v57 = vadd.f32 %v2988_v40, %v1853_v50  ;;  %1754 = vst.msk [vmem:[#allocation2 + $0x338] sm:$0xff] %vm264_vm0, %v1626_v53  ;;  %v436_v53 = vld [vmem:[#allocation2 + $0x158] sm:$0xff] }
  0xe4   : > { %1659 = vst.msk [vmem:[#allocation2 + $0x40] sm:$0xff] %vm264_vm0, %v1531_v58  ;;  %v2677_v0 = vld [vmem:[%s2819_s28 + $0x178] sm:$0xff] }
  0xe5   : > { %2113 = vst.msk [vmem:[%s2999_s7 + $0x238] sm:$0xff] %vm264_vm0, %v1985_v57  ;;  %v500_v23 = vld [vmem:[#allocation2 + $0x358] sm:$0xff] }
  0xe6   : > { %1691 = vst.msk [vmem:[#allocation2 + $0x140] sm:$0xff] %vm264_vm0, %v1563_v60  ;;  %v2645_v60 = vld [vmem:[%s2819_s28 + $0x78] sm:$0xff] }
  0xe7   : > { %1723 = vst.msk [vmem:[#allocation2 + $0x240] sm:$0xff] %vm264_vm0, %v1595_v3 }
  0xe8   : > { %v3379_v16 = vpop.f32.mrf.mxu2  ;;  %v3381_v52 = vpop.f32.mrf.mxu3  ;;  %1755 = vst.msk [vmem:[#allocation2 + $0x340] sm:$0xff] %vm264_vm0, %v1627_v28  ;;  %v2693_v28 = vld [vmem:[%s2819_s28 + $0x1f8] sm:$0xff] }
  0xe9   : > { %v3387_v15 = vpop.f32.mrf.mxu0  ;;  %v3389_v63 = vpop.f32.mrf.mxu1  ;;  %v1596_v56 = vadd.f32 %v3379_v16, %v466_v10  ;;  %v1628_v5 = vadd.f32 %v3381_v52, %v498_v29  ;;  %1660 = vst.msk [vmem:[#allocation2 + $0x48] sm:$0xff] %vm264_vm0, %v1532_v30  ;;  %v405_v10 = vld [vmem:[#allocation2 + $0x60] sm:$0xff] }
  0xea   : > { %v1533_v8 = vadd.f32 %v3387_v15, %v403_v61  ;;  %1692 = vst.msk [vmem:[#allocation2 + $0x148] sm:$0xff] %vm264_vm0, %v1564_v42  ;;  %v1885_v51 = vld [vmem:[#allocation2 + $0x338] sm:$0xff]  ;;  %v1565_v47 = vadd.f32 %v3389_v63, %v435_v26  ;;  %v437_v30 = vld [vmem:[#allocation2 + $0x160] sm:$0xff] }
  0xeb   : > { %1724 = vst.msk [vmem:[#allocation2 + $0x248] sm:$0xff] %vm264_vm0, %v1596_v56  ;;  %v2017_v14 = vadd.f32 %v2988_v40, %v1885_v51  ;;  %v1790_v17 = vld [vmem:[#allocation2 + $0x40] sm:$0xff]  ;;  %v2661_v63 = vld [vmem:[%s2819_s28 + $0xf8] sm:$0xff] }
  0xec   : > { %2577 = vmatmul.msk.bf16.gmra.mxu0 %vm264_vm0, %v2643_v18  ;;  %2593 = vmatmul.msk.bf16.gmra.mxu1 %vm264_vm0, %v2659_v1  ;;  %1756 = vst.msk [vmem:[#allocation2 + $0x348] sm:$0xff] %vm264_vm0, %v1628_v5  ;;  %v1922_v15 = vadd.f32 %v2988_v40, %v1790_v17  ;;  %v469_v29 = vld [vmem:[#allocation2 + $0x260] sm:$0xff] }
  0xed   : > { %2609 = vmatmul.msk.bf16.gmra.mxu2 %vm264_vm0, %v2675_v21  ;;  %2625 = vmatmul.msk.bf16.gmra.mxu3 %vm264_vm0, %v2691_v6  ;;  %v1822_v18 = vld [vmem:[#allocation2 + $0x140] sm:$0xff]  ;;  %1661 = vst.msk [vmem:[#allocation2 + $0x50] sm:$0xff] %vm264_vm0, %v1533_v8 }
  0xee   : > { %2145 = vst.msk [vmem:[%s2999_s7 + $0x338] sm:$0xff] %vm264_vm0, %v2017_v14  ;;  %v1954_v21 = vadd.f32 %v2988_v40, %v1822_v18  ;;  %v1854_v19 = vld [vmem:[#allocation2 + $0x240] sm:$0xff] }
  0xef   : > { %2050 = vst.msk [vmem:[%s2999_s7 + $0x40] sm:$0xff] %vm264_vm0, %v1922_v15  ;;  %v1986_v2 = vadd.f32 %v2988_v40, %v1854_v19  ;;  %v1886_v6 = vld [vmem:[#allocation2 + $0x340] sm:$0xff] }
  0xf0   : > { %v3411_v31 = vpop.f32.mrf.mxu2  ;;  %v3413_v32 = vpop.f32.mrf.mxu3  ;;  %2082 = vst.msk [vmem:[%s2999_s7 + $0x140] sm:$0xff] %vm264_vm0, %v1954_v21  ;;  %v2018_v22 = vadd.f32 %v2988_v40, %v1886_v6  ;;  %v1791_v7 = vld [vmem:[#allocation2 + $0x48] sm:$0xff] }
  0xf1   : > { %v3421_v38 = vpop.f32.mrf.mxu0  ;;  %v3423_v39 = vpop.f32.mrf.mxu1  ;;  %2114 = vst.msk [vmem:[%s2999_s7 + $0x240] sm:$0xff] %vm264_vm0, %v1986_v2  ;;  %v1923_v25 = vadd.f32 %v2988_v40, %v1791_v7  ;;  %v1823_v24 = vld [vmem:[#allocation2 + $0x148] sm:$0xff]  ;;  %v1597_v50 = vadd.f32 %v3411_v31, %v467_v34  ;;  %v1629_v59 = vadd.f32 %v3413_v32, %v499_v37  ;;  %v501_v2 = vld [vmem:[#allocation2 + $0x360] sm:$0xff] }
  0xf2   : > { %2146 = vst.msk [vmem:[%s2999_s7 + $0x340] sm:$0xff] %vm264_vm0, %v2018_v22  ;;  %v1955_v27 = vadd.f32 %v2988_v40, %v1823_v24  ;;  %v1855_v33 = vld [vmem:[#allocation2 + $0x248] sm:$0xff]  ;;  %v1534_v3 = vadd.f32 %v3421_v38, %v404_v48  ;;  %v1566_v31 = vadd.f32 %v3423_v39, %v436_v53 }
  0xf3   : > { %2051 = vst.msk [vmem:[%s2999_s7 + $0x48] sm:$0xff] %vm264_vm0, %v1923_v25  ;;  %v1987_v35 = vadd.f32 %v2988_v40, %v1855_v33  ;;  %v1887_v36 = vld [vmem:[#allocation2 + $0x348] sm:$0xff] }
  0xf4   : > { %2083 = vst.msk [vmem:[%s2999_s7 + $0x148] sm:$0xff] %vm264_vm0, %v1955_v27  ;;  %v2019_v45 = vadd.f32 %v2988_v40, %v1887_v36  ;;  %v1792_v46 = vld [vmem:[#allocation2 + $0x50] sm:$0xff]  ;;  %v406_v24 = vld [vmem:[#allocation2 + $0x68] sm:$0xff] }
  0xf5   : > { %2115 = vst.msk [vmem:[%s2999_s7 + $0x248] sm:$0xff] %vm264_vm0, %v1987_v35  ;;  %v1924_v49 = vadd.f32 %v2988_v40, %v1792_v46  ;;  %v438_v33 = vld [vmem:[#allocation2 + $0x168] sm:$0xff] }
  0xf6   : > { %2147 = vst.msk [vmem:[%s2999_s7 + $0x348] sm:$0xff] %vm264_vm0, %v2019_v45  ;;  %v470_v37 = vld [vmem:[#allocation2 + $0x268] sm:$0xff]  ;;  %v3596_v45 = vld [vmem:[%s4020_s2] ss:$0 sm:$0xff] }
  0xf7   : > { %2052 = vst.msk [vmem:[%s2999_s7 + $0x50] sm:$0xff] %vm264_vm0, %v1924_v49  ;;  %v502_v48 = vld [vmem:[#allocation2 + $0x368] sm:$0xff]  ;;  %v407_v49 = vld [vmem:[#allocation2 + $0x70] sm:$0xff] }
  0xf8   : > { %v3445_v4 = vpop.f32.mrf.mxu2  ;;  %v3447_v9 = vpop.f32.mrf.mxu3  ;;  %1693 = vst.msk [vmem:[#allocation2 + $0x150] sm:$0xff] %vm264_vm0, %v1565_v47 }
  0xf9   : > { %v3453_v55 = vpop.f32.mrf.mxu0  ;;  %v3455_v11 = vpop.f32.mrf.mxu1  ;;  %1725 = vst.msk [vmem:[#allocation2 + $0x250] sm:$0xff] %vm264_vm0, %v1597_v50  ;;  %v1598_v32 = vadd.f32 %v3445_v4, %v468_v54  ;;  %v1630_v38 = vadd.f32 %v3447_v9, %v500_v23  ;;  %v439_v50 = vld [vmem:[#allocation2 + $0x170] sm:$0xff] }
  0xfa   : > { %1757 = vst.msk [vmem:[#allocation2 + $0x350] sm:$0xff] %vm264_vm0, %v1629_v59  ;;  %v1535_v39 = vadd.f32 %v3453_v55, %v405_v10  ;;  %v1567_v4 = vadd.f32 %v3455_v11, %v437_v30 }
  0xfb   : > { %1662 = vst.msk [vmem:[#allocation2 + $0x58] sm:$0xff] %vm264_vm0, %v1534_v3  ;;  %v408_v3 = vld [vmem:[#allocation2 + $0x78] sm:$0xff] }
  0xfc   : > { %2578 = vmatmul.msk.bf16.gmra.mxu0 %vm264_vm0, %v2644_v12  ;;  %2594 = vmatmul.msk.bf16.gmra.mxu1 %vm264_vm0, %v2660_v13  ;;  %1694 = vst.msk [vmem:[#allocation2 + $0x158] sm:$0xff] %vm264_vm0, %v1566_v31 }
  0xfd   : > { %2610 = vmatmul.msk.bf16.gmra.mxu2 %vm264_vm0, %v2676_v43  ;;  %2626 = vmatmul.msk.bf16.gmra.mxu3 %vm264_vm0, %v2692_v62  ;;  %1726 = vst.msk [vmem:[#allocation2 + $0x258] sm:$0xff] %vm264_vm0, %v1598_v32 }
  0xfe   : > { %1758 = vst.msk [vmem:[#allocation2 + $0x358] sm:$0xff] %vm264_vm0, %v1630_v38 }
  0xff   : > { %v1824_v55 = vld [vmem:[#allocation2 + $0x150] sm:$0xff]  ;;  %1663 = vst.msk [vmem:[#allocation2 + $0x60] sm:$0xff] %vm264_vm0, %v1535_v39 }
 0x100   : > { %v3475_v16 = vpop.f32.mrf.mxu2  ;;  %v3477_v52 = vpop.f32.mrf.mxu3  ;;  %v1956_v43 = vadd.f32 %v2988_v40, %v1824_v55  ;;  %v1856_v56 = vld [vmem:[#allocation2 + $0x250] sm:$0xff]  ;;  %1695 = vst.msk [vmem:[#allocation2 + $0x160] sm:$0xff] %vm264_vm0, %v1567_v4 }
 0x101   : > { %v3483_v1 = vpop.f32.mrf.mxu0  ;;  %v3485_v20 = vpop.f32.mrf.mxu1  ;;  %v1599_v9 = vadd.f32 %v3475_v16, %v469_v29  ;;  %v1988_v11 = vadd.f32 %v2988_v40, %v1856_v56  ;;  %v1888_v62 = vld [vmem:[#allocation2 + $0x350] sm:$0xff]  ;;  %v1631_v36 = vadd.f32 %v3477_v52, %v501_v2 }
 0x102   : > { %2084 = vst.msk [vmem:[%s2999_s7 + $0x150] sm:$0xff] %vm264_vm0, %v1956_v43  ;;  %v2020_v5 = vadd.f32 %v2988_v40, %v1888_v62  ;;  %v1793_v8 = vld [vmem:[#allocation2 + $0x58] sm:$0xff]  ;;  %v1536_v47 = vadd.f32 %v3483_v1, %v406_v24  ;;  %v471_v1 = vld [vmem:[#allocation2 + $0x270] sm:$0xff] }
 0x103   : > { %1727 = vst.msk [vmem:[#allocation2 + $0x260] sm:$0xff] %vm264_vm0, %v1599_v9  ;;  %v1925_v51 = vadd.f32 %v2988_v40, %v1793_v8  ;;  %v1825_v16 = vld [vmem:[#allocation2 + $0x158] sm:$0xff] }
 0x104   : > { %2116 = vst.msk [vmem:[%s2999_s7 + $0x250] sm:$0xff] %vm264_vm0, %v1988_v11  ;;  %v1957_v15 = vadd.f32 %v2988_v40, %v1825_v16  ;;  %v1857_v18 = vld [vmem:[#allocation2 + $0x258] sm:$0xff] }
 0x105   : > { %2148 = vst.msk [vmem:[%s2999_s7 + $0x350] sm:$0xff] %vm264_vm0, %v2020_v5  ;;  %v1989_v21 = vadd.f32 %v2988_v40, %v1857_v18  ;;  %v1889_v19 = vld [vmem:[#allocation2 + $0x358] sm:$0xff] }
 0x106   : > { %2053 = vst.msk [vmem:[%s2999_s7 + $0x58] sm:$0xff] %vm264_vm0, %v1925_v51  ;;  %v2021_v7 = vadd.f32 %v2988_v40, %v1889_v19  ;;  %v1794_v25 = vld [vmem:[#allocation2 + $0x60] sm:$0xff]  ;;  %v440_v11 = vld [vmem:[#allocation2 + $0x178] sm:$0xff] }
 0x107   : > { %2085 = vst.msk [vmem:[%s2999_s7 + $0x158] sm:$0xff] %vm264_vm0, %v1957_v15  ;;  %v1926_v26 = vadd.f32 %v2988_v40, %v1794_v25  ;;  %v1826_v27 = vld [vmem:[#allocation2 + $0x160] sm:$0xff]  ;;  %v472_v8 = vld [vmem:[#allocation2 + $0x278] sm:$0xff] }
 0x108   : > { %v3505_v41 = vpop.f32.mrf.mxu2  ;;  %v3507_v44 = vpop.f32.mrf.mxu3  ;;  %2117 = vst.msk [vmem:[%s2999_s7 + $0x258] sm:$0xff] %vm264_vm0, %v1989_v21  ;;  %v1958_v34 = vadd.f32 %v2988_v40, %v1826_v27  ;;  %v1568_v40 = vadd.f32 %v3485_v20, %v438_v33  ;;  %v503_v20 = vld [vmem:[#allocation2 + $0x370] sm:$0xff]  ;;  %v504_v15 = vld [vmem:[#allocation2 + $0x378] sm:$0xff]  ;;  %v409_v25 = vld [vmem:[#allocation2 + $0x80] sm:$0xff] }
 0x109   : > { %v3517_v57 = vpop.f32.mrf.mxu0  ;;  %v3519_v58 = vpop.f32.mrf.mxu1  ;;  %2149 = vst.msk [vmem:[%s2999_s7 + $0x358] sm:$0xff] %vm264_vm0, %v2021_v7  ;;  %v1600_v52 = vadd.f32 %v3505_v41, %v470_v37  ;;  %v1632_v59 = vadd.f32 %v3507_v44, %v502_v48  ;;  %v441_v27 = vld [vmem:[#allocation2 + $0x180] sm:$0xff]  ;;  %v442_v48 = vld [vmem:[#allocation2 + $0x188] sm:$0xff] }
 0x10a   : > { %v1858_v35 = vld [vmem:[#allocation2 + $0x260] sm:$0xff]  ;;  %2054 = vst.msk [vmem:[%s2999_s7 + $0x60] sm:$0xff] %vm264_vm0, %v1926_v26  ;;  %v1569_v41 = vadd.f32 %v3519_v58, %v439_v50 }
 0x10b   : > { %v1990_v46 = vadd.f32 %v3596_v45, %v1858_v35  ;;  %2086 = vst.msk [vmem:[%s2999_s7 + $0x160] sm:$0xff] %vm264_vm0, %v1958_v34  ;;  %v505_v37 = vld [vmem:[#allocation2 + $0x380] sm:$0xff] }
 0x10c   : > { %2579 = vmatmul.msk.bf16.gmra.mxu0 %vm264_vm0, %v2645_v60  ;;  %2595 = vmatmul.msk.bf16.gmra.mxu1 %vm264_vm0, %v2661_v63  ;;  %1759 = vst.msk [vmem:[#allocation2 + $0x360] sm:$0xff] %vm264_vm0, %v1631_v36  ;;  %v1537_v60 = vadd.f32 %v3517_v57, %v407_v49  ;;  %v473_v36 = vld [vmem:[#allocation2 + $0x280] sm:$0xff] }
 0x10d   : > { %2611 = vmatmul.msk.bf16.gmra.mxu2 %vm264_vm0, %v2677_v0  ;;  %2627 = vmatmul.msk.bf16.gmra.mxu3 %vm264_vm0, %v2693_v28  ;;  %2118 = vst.msk [vmem:[%s2999_s7 + $0x260] sm:$0xff] %vm264_vm0, %v1990_v46 }
 0x10e   : > { %1664 = vst.msk [vmem:[#allocation2 + $0x68] sm:$0xff] %vm264_vm0, %v1536_v47 }
 0x10f   : > { %1696 = vst.msk [vmem:[#allocation2 + $0x168] sm:$0xff] %vm264_vm0, %v1568_v40  ;;  %v474_v40 = vld [vmem:[#allocation2 + $0x288] sm:$0xff] }
 0x110   : > { %v3543_v61 = vpop.f32.mrf.mxu2  ;;  %v3545_v42 = vpop.f32.mrf.mxu3  ;;  %1728 = vst.msk [vmem:[#allocation2 + $0x268] sm:$0xff] %vm264_vm0, %v1600_v52 }
 0x111   : > { %v3551_v12 = vpop.f32.mrf.mxu0  ;;  %v3553_v13 = vpop.f32.mrf.mxu1  ;;  %v1601_v23 = vadd.f32 %v3543_v61, %v471_v1  ;;  %1760 = vst.msk [vmem:[#allocation2 + $0x368] sm:$0xff] %vm264_vm0, %v1632_v59  ;;  %v1633_v44 = vadd.f32 %v3545_v42, %v503_v20 }
 0x112   : > { %1665 = vst.msk [vmem:[#allocation2 + $0x70] sm:$0xff] %vm264_vm0, %v1537_v60  ;;  %v1538_v57 = vadd.f32 %v3551_v12, %v408_v3  ;;  %v1570_v7 = vadd.f32 %v3553_v13, %v440_v11 }
 0x113   : > { %1697 = vst.msk [vmem:[#allocation2 + $0x170] sm:$0xff] %vm264_vm0, %v1569_v41  ;;  %v1890_v28 = vld [vmem:[#allocation2 + $0x360] sm:$0xff] }
 0x114   : > { %1729 = vst.msk [vmem:[#allocation2 + $0x270] sm:$0xff] %vm264_vm0, %v1601_v23  ;;  %v2022_v10 = vadd.f32 %v3596_v45, %v1890_v28 }
 0x115   : > { %v1795_v32 = vld [vmem:[#allocation2 + $0x68] sm:$0xff]  ;;  %1761 = vst.msk [vmem:[#allocation2 + $0x370] sm:$0xff] %vm264_vm0, %v1633_v44 }
 0x116   : > { %v1927_v30 = vadd.f32 %v3596_v45, %v1795_v32  ;;  %v1827_v38 = vld [vmem:[#allocation2 + $0x168] sm:$0xff]  ;;  %1666 = vst.msk [vmem:[#allocation2 + $0x78] sm:$0xff] %vm264_vm0, %v1538_v57 }
 0x117   : > { %2150 = vst.msk [vmem:[%s2999_s7 + $0x360] sm:$0xff] %vm264_vm0, %v2022_v10  ;;  %v1959_v61 = vadd.f32 %v3596_v45, %v1827_v38  ;;  %v1859_v42 = vld [vmem:[#allocation2 + $0x268] sm:$0xff] }
 0x118   : > { %v3567_v14 = vpop.f32.mrf.mxu2  ;;  %v3569_v17 = vpop.f32.mrf.mxu3  ;;  %2055 = vst.msk [vmem:[%s2999_s7 + $0x68] sm:$0xff] %vm264_vm0, %v1927_v30  ;;  %v1991_v4 = vadd.f32 %v3596_v45, %v1859_v42  ;;  %v1891_v9 = vld [vmem:[#allocation2 + $0x368] sm:$0xff]  ;;  %v411_v42 = vld [vmem:[#allocation2 + $0x90] sm:$0xff] }
 0x119   : > { %v3577_v6 = vpop.f32.mrf.mxu0  ;;  %v3579_v22 = vpop.f32.mrf.mxu1  ;;  %2087 = vst.msk [vmem:[%s2999_s7 + $0x168] sm:$0xff] %vm264_vm0, %v1959_v61  ;;  %v2023_v12 = vadd.f32 %v3596_v45, %v1891_v9  ;;  %v1796_v55 = vld [vmem:[#allocation2 + $0x70] sm:$0xff]  ;;  %v1602_v26 = vadd.f32 %v3567_v14, %v472_v8  ;;  %v1634_v35 = vadd.f32 %v3569_v17, %v504_v15  ;;  %v410_v14 = vld [vmem:[#allocation2 + $0x88] sm:$0xff] }
 0x11a   : > { %2119 = vst.msk [vmem:[%s2999_s7 + $0x268] sm:$0xff] %vm264_vm0, %v1991_v4  ;;  %v1928_v43 = vadd.f32 %v3596_v45, %v1796_v55  ;;  %v1828_v56 = vld [vmem:[#allocation2 + $0x170] sm:$0xff]  ;;  %v1539_v13 = vadd.f32 %v3577_v6, %v409_v25  ;;  %v1571_v46 = vadd.f32 %v3579_v22, %v441_v27  ;;  %v506_v30 = vld [vmem:[#allocation2 + $0x388] sm:$0xff] }
 0x11b   : > { %2151 = vst.msk [vmem:[%s2999_s7 + $0x368] sm:$0xff] %vm264_vm0, %v2023_v12  ;;  %v1960_v62 = vadd.f32 %v3596_v45, %v1828_v56  ;;  %v1860_v5 = vld [vmem:[#allocation2 + $0x270] sm:$0xff] }
 0x11c   : > { %2056 = vst.msk [vmem:[%s2999_s7 + $0x70] sm:$0xff] %vm264_vm0, %v1928_v43  ;;  %v1992_v51 = vadd.f32 %v3596_v45, %v1860_v5  ;;  %v1892_v16 = vld [vmem:[#allocation2 + $0x370] sm:$0xff] }
 0x11d   : > { %2088 = vst.msk [vmem:[%s2999_s7 + $0x170] sm:$0xff] %vm264_vm0, %v1960_v62  ;;  %v2024_v19 = vadd.f32 %v3596_v45, %v1892_v16  ;;  %v1797_v2 = vld [vmem:[#allocation2 + $0x78] sm:$0xff]  ;;  %v443_v55 = vld [vmem:[#allocation2 + $0x190] sm:$0xff] }
 0x11e   : > { %2120 = vst.msk [vmem:[%s2999_s7 + $0x270] sm:$0xff] %vm264_vm0, %v1992_v51  ;;  %v1929_v24 = vadd.f32 %v3596_v45, %v1797_v2  ;;  %v475_v62 = vld [vmem:[#allocation2 + $0x290] sm:$0xff] }
 0x11f   : > { %2152 = vst.msk [vmem:[%s2999_s7 + $0x370] sm:$0xff] %vm264_vm0, %v2024_v19  ;;  %v507_v51 = vld [vmem:[#allocation2 + $0x390] sm:$0xff]  ;;  %v412_v19 = vld [vmem:[#allocation2 + $0x98] sm:$0xff] }
 0x120   : > { %v3606_v53 = vpop.f32.mrf.mxu2  ;;  %v3608_v54 = vpop.f32.mrf.mxu3  ;;  %2057 = vst.msk [vmem:[%s2999_s7 + $0x78] sm:$0xff] %vm264_vm0, %v1929_v24  ;;  %v476_v24 = vld [vmem:[#allocation2 + $0x298] sm:$0xff] }
 0x121   : > { %v3614_v63 = vpop.f32.mrf.mxu0  ;;  %v3616_v0 = vpop.f32.mrf.mxu1  ;;  %1698 = vst.msk [vmem:[#allocation2 + $0x178] sm:$0xff] %vm264_vm0, %v1570_v7  ;;  %v1603_v47 = vadd.f32 %v3606_v53, %v473_v36  ;;  %v1635_v17 = vadd.f32 %v3608_v54, %v505_v37 }
 0x122   : > { %1730 = vst.msk [vmem:[#allocation2 + $0x278] sm:$0xff] %vm264_vm0, %v1602_v26  ;;  %v1540_v6 = vadd.f32 %v3614_v63, %v410_v14  ;;  %v1572_v22 = vadd.f32 %v3616_v0, %v442_v48 }
 0x123   : > { %1762 = vst.msk [vmem:[#allocation2 + $0x378] sm:$0xff] %vm264_vm0, %v1634_v35 }
 0x124   : > { %1667 = vst.msk [vmem:[#allocation2 + $0x80] sm:$0xff] %vm264_vm0, %v1539_v13 }
 0x125   : > { %1699 = vst.msk [vmem:[#allocation2 + $0x180] sm:$0xff] %vm264_vm0, %v1571_v46 }
 0x126   : > { %1731 = vst.msk [vmem:[#allocation2 + $0x280] sm:$0xff] %vm264_vm0, %v1603_v47 }
 0x127   : > { %1763 = vst.msk [vmem:[#allocation2 + $0x380] sm:$0xff] %vm264_vm0, %v1635_v17 }
 0x128   : > { %v3628_v58 = vpop.f32.mrf.mxu2  ;;  %v3630_v31 = vpop.f32.mrf.mxu3  ;;  %v1829_v54 = vld [vmem:[#allocation2 + $0x178] sm:$0xff]  ;;  %1668 = vst.msk [vmem:[#allocation2 + $0x88] sm:$0xff] %vm264_vm0, %v1540_v6 }
 0x129   : > { %v3636_v29 = vpop.f32.mrf.mxu0  ;;  %v3638_v39 = vpop.f32.mrf.mxu1  ;;  %v1604_v50 = vadd.f32 %v3628_v58, %v474_v40  ;;  %v1961_v1 = vadd.f32 %v3596_v45, %v1829_v54  ;;  %v1861_v60 = vld [vmem:[#allocation2 + $0x278] sm:$0xff]  ;;  %1700 = vst.msk [vmem:[#allocation2 + $0x188] sm:$0xff] %vm264_vm0, %v1572_v22  ;;  %v1636_v11 = vadd.f32 %v3630_v31, %v506_v30 }
 0x12a   : > { %v1993_v20 = vadd.f32 %v3596_v45, %v1861_v60  ;;  %v1893_v63 = vld [vmem:[#allocation2 + $0x378] sm:$0xff]  ;;  %v1541_v8 = vadd.f32 %v3636_v29, %v411_v42  ;;  %v1573_v15 = vadd.f32 %v3638_v39, %v443_v55 }
 0x12b   : > { %1732 = vst.msk [vmem:[#allocation2 + $0x288] sm:$0xff] %vm264_vm0, %v1604_v50  ;;  %v2025_v0 = vadd.f32 %v3596_v45, %v1893_v63  ;;  %v1798_v41 = vld [vmem:[#allocation2 + $0x80] sm:$0xff]  ;;  %v444_v31 = vld [vmem:[#allocation2 + $0x198] sm:$0xff] }
 0x12c   : > { %2089 = vst.msk [vmem:[%s2999_s7 + $0x178] sm:$0xff] %vm264_vm0, %v1961_v1  ;;  %v1930_v3 = vadd.f32 %v3596_v45, %v1798_v41  ;;  %v1830_v23 = vld [vmem:[#allocation2 + $0x180] sm:$0xff]  ;;  %v508_v39 = vld [vmem:[#allocation2 + $0x398] sm:$0xff] }
 0x12d   : > { %2121 = vst.msk [vmem:[%s2999_s7 + $0x278] sm:$0xff] %vm264_vm0, %v1993_v20  ;;  %v1962_v28 = vadd.f32 %v3596_v45, %v1830_v23  ;;  %v1862_v58 = vld [vmem:[#allocation2 + $0x280] sm:$0xff] }
 0x12e   : > { %2153 = vst.msk [vmem:[%s2999_s7 + $0x378] sm:$0xff] %vm264_vm0, %v2025_v0  ;;  %v1994_v10 = vadd.f32 %v3596_v45, %v1862_v58  ;;  %v1894_v32 = vld [vmem:[#allocation2 + $0x380] sm:$0xff] }
 0x12f   : > { %2058 = vst.msk [vmem:[%s2999_s7 + $0x80] sm:$0xff] %vm264_vm0, %v1930_v3  ;;  %v2026_v38 = vadd.f32 %v3596_v45, %v1894_v32  ;;  %v1799_v61 = vld [vmem:[#allocation2 + $0x88] sm:$0xff]  ;;  %v445_v1 = vld [vmem:[#allocation2 + $0x1a0] sm:$0xff] }
 0x130   : > { %v3658_v18 = vpop.f32.mrf.mxu2  ;;  %v3660_v21 = vpop.f32.mrf.mxu3  ;;  %2090 = vst.msk [vmem:[%s2999_s7 + $0x180] sm:$0xff] %vm264_vm0, %v1962_v28  ;;  %v1931_v9 = vadd.f32 %v3596_v45, %v1799_v61  ;;  %v1831_v12 = vld [vmem:[#allocation2 + $0x188] sm:$0xff]  ;;  %v477_v63 = vld [vmem:[#allocation2 + $0x2a0] sm:$0xff] }
 0x131   : > { %v3670_v33 = vpop.f32.mrf.mxu0  ;;  %v3672_v34 = vpop.f32.mrf.mxu1  ;;  %2122 = vst.msk [vmem:[%s2999_s7 + $0x280] sm:$0xff] %vm264_vm0, %v1994_v10  ;;  %v1963_v43 = vadd.f32 %v3596_v45, %v1831_v12  ;;  %v1605_v2 = vadd.f32 %v3658_v18, %v475_v62  ;;  %v1637_v29 = vadd.f32 %v3660_v21, %v507_v51  ;;  %v413_v18 = vld [vmem:[#allocation2 + $0xa0] sm:$0xff]  ;;  %v414_v32 = vld [vmem:[#allocation2 + $0xa8] sm:$0xff] }
 0x132   : > { %2154 = vst.msk [vmem:[%s2999_s7 + $0x380] sm:$0xff] %vm264_vm0, %v2026_v38  ;;  %v1863_v56 = vld [vmem:[#allocation2 + $0x288] sm:$0xff]  ;;  %v1542_v26 = vadd.f32 %v3670_v33, %v412_v19  ;;  %v1574_v27 = vadd.f32 %v3672_v34, %v444_v31  ;;  %v509_v23 = vld [vmem:[#allocation2 + $0x3a0] sm:$0xff] }
 0x133   : > { %2059 = vst.msk [vmem:[%s2999_s7 + $0x88] sm:$0xff] %vm264_vm0, %v1931_v9  ;;  %v1995_v5 = vadd.f32 %v3596_v45, %v1863_v56  ;;  %v446_v61 = vld [vmem:[#allocation2 + $0x1a8] sm:$0xff] }
 0x134   : > { %2091 = vst.msk [vmem:[%s2999_s7 + $0x188] sm:$0xff] %vm264_vm0, %v1963_v43  ;;  %v478_v12 = vld [vmem:[#allocation2 + $0x2a8] sm:$0xff] }
 0x135   : > { %2123 = vst.msk [vmem:[%s2999_s7 + $0x288] sm:$0xff] %vm264_vm0, %v1995_v5  ;;  %v510_v43 = vld [vmem:[#allocation2 + $0x3a8] sm:$0xff] }
 0x136   : > { %1764 = vst.msk [vmem:[#allocation2 + $0x388] sm:$0xff] %vm264_vm0, %v1636_v11  ;;  %v415_v11 = vld [vmem:[#allocation2 + $0xb0] sm:$0xff] }
 0x137   : > { %1669 = vst.msk [vmem:[#allocation2 + $0x90] sm:$0xff] %vm264_vm0, %v1541_v8  ;;  %v479_v8 = vld [vmem:[#allocation2 + $0x2b0] sm:$0xff] }
 0x138   : > { %v3688_v49 = vpop.f32.mrf.mxu2  ;;  %v3690_v52 = vpop.f32.mrf.mxu3  ;;  %1701 = vst.msk [vmem:[#allocation2 + $0x190] sm:$0xff] %vm264_vm0, %v1573_v15 }
 0x139   : > { %v3696_v53 = vpop.f32.mrf.mxu0  ;;  %v3700_v59 = vpop.f32.mrf.mxu1  ;;  %1733 = vst.msk [vmem:[#allocation2 + $0x290] sm:$0xff] %vm264_vm0, %v1605_v2  ;;  %v1606_v35 = vadd.f32 %v3688_v49, %v476_v24  ;;  %v1638_v36 = vadd.f32 %v3690_v52, %v508_v39 }
 0x13a   : > { %1765 = vst.msk [vmem:[#allocation2 + $0x390] sm:$0xff] %vm264_vm0, %v1637_v29  ;;  %v1543_v33 = vadd.f32 %v3696_v53, %v413_v18  ;;  %v1575_v10 = vadd.f32 %v3700_v59, %v445_v1  ;;  %v512_v1 = vld [vmem:[#allocation2 + $0x3b8] sm:$0xff] }
 0x13b   : > { %1670 = vst.msk [vmem:[#allocation2 + $0x98] sm:$0xff] %vm264_vm0, %v1542_v26 }
 0x13c   : > { %1702 = vst.msk [vmem:[#allocation2 + $0x198] sm:$0xff] %vm264_vm0, %v1574_v27 }
 0x13d   : > { %v1895_v34 = vld [vmem:[#allocation2 + $0x388] sm:$0xff]  ;;  %1734 = vst.msk [vmem:[#allocation2 + $0x298] sm:$0xff] %vm264_vm0, %v1606_v35 }
 0x13e   : > { %v2027_v37 = vadd.f32 %v3596_v45, %v1895_v34  ;;  %v1800_v46 = vld [vmem:[#allocation2 + $0x90] sm:$0xff]  ;;  %1766 = vst.msk [vmem:[#allocation2 + $0x398] sm:$0xff] %vm264_vm0, %v1638_v36 }
 0x13f   : > { %v1932_v47 = vadd.f32 %v3596_v45, %v1800_v46  ;;  %v1832_v48 = vld [vmem:[#allocation2 + $0x190] sm:$0xff]  ;;  %1671 = vst.msk [vmem:[#allocation2 + $0xa0] sm:$0xff] %vm264_vm0, %v1543_v33 }
 0x140   : > { %v3712_v44 = vpop.f32.mrf.mxu2  ;;  %v3714_v57 = vpop.f32.mrf.mxu3  ;;  %2155 = vst.msk [vmem:[%s2999_s7 + $0x388] sm:$0xff] %vm264_vm0, %v2027_v37  ;;  %v1964_v40 = vadd.f32 %v3596_v45, %v1832_v48  ;;  %v1864_v6 = vld [vmem:[#allocation2 + $0x290] sm:$0xff] }
 0x141   : > { %v3725_v4 = vpop.f32.mrf.mxu0  ;;  %v3738_v16 = vpop.f32.mrf.mxu1  ;;  %2060 = vst.msk [vmem:[%s2999_s7 + $0x90] sm:$0xff] %vm264_vm0, %v1932_v47  ;;  %v1996_v49 = vadd.f32 %v3596_v45, %v1864_v6  ;;  %v1896_v52 = vld [vmem:[#allocation2 + $0x390] sm:$0xff]  ;;  %v1607_v38 = vadd.f32 %v3712_v44, %v477_v63  ;;  %v1639_v9 = vadd.f32 %v3714_v57, %v509_v23  ;;  %v448_v6 = vld [vmem:[#allocation2 + $0x1b8] sm:$0xff]  ;;  %v417_v63 = vld [vmem:[#allocation2 + $0xc0] sm:$0xff] }
 0x142   : > { %2092 = vst.msk [vmem:[%s2999_s7 + $0x190] sm:$0xff] %vm264_vm0, %v1964_v40  ;;  %v2028_v22 = vadd.f32 %v3596_v45, %v1896_v52  ;;  %v1801_v50 = vld [vmem:[#allocation2 + $0x98] sm:$0xff]  ;;  %v1544_v59 = vadd.f32 %v3725_v4, %v414_v32  ;;  %v1576_v44 = vadd.f32 %v3738_v16, %v446_v61  ;;  %v447_v57 = vld [vmem:[#allocation2 + $0x1b0] sm:$0xff] }
 0x143   : > { %2124 = vst.msk [vmem:[%s2999_s7 + $0x290] sm:$0xff] %vm264_vm0, %v1996_v49  ;;  %v1933_v53 = vadd.f32 %v3596_v45, %v1801_v50  ;;  %v1833_v54 = vld [vmem:[#allocation2 + $0x198] sm:$0xff] }
 0x144   : > { %2156 = vst.msk [vmem:[%s2999_s7 + $0x390] sm:$0xff] %vm264_vm0, %v2028_v22  ;;  %v1965_v60 = vadd.f32 %v3596_v45, %v1833_v54  ;;  %v1865_v20 = vld [vmem:[#allocation2 + $0x298] sm:$0xff] }
 0x145   : > { %2061 = vst.msk [vmem:[%s2999_s7 + $0x98] sm:$0xff] %vm264_vm0, %v1933_v53  ;;  %v1997_v41 = vadd.f32 %v3596_v45, %v1865_v20  ;;  %v1897_v3 = vld [vmem:[#allocation2 + $0x398] sm:$0xff] }
 0x146   : > { %2093 = vst.msk [vmem:[%s2999_s7 + $0x198] sm:$0xff] %vm264_vm0, %v1965_v60  ;;  %v2029_v28 = vadd.f32 %v3596_v45, %v1897_v3  ;;  %v1802_v58 = vld [vmem:[#allocation2 + $0xa0] sm:$0xff]  ;;  %v480_v50 = vld [vmem:[#allocation2 + $0x2b8] sm:$0xff] }
 0x147   : > { %2125 = vst.msk [vmem:[%s2999_s7 + $0x298] sm:$0xff] %vm264_vm0, %v1997_v41  ;;  %v1934_v30 = vadd.f32 %v3596_v45, %v1802_v58  ;;  %v481_v58 = vld [vmem:[#allocation2 + $0x2c0] sm:$0xff] }
 0x148   : > { %v3746_v7 = vpop.f32.mrf.mxu2  ;;  %v3748_v25 = vpop.f32.mrf.mxu3  ;;  %2157 = vst.msk [vmem:[%s2999_s7 + $0x398] sm:$0xff] %vm264_vm0, %v2029_v28 }
 0x149   : > { %v3760_v21 = vpop.f32.mrf.mxu0  ;;  %v1338_v13 = vpop.f32.mrf.mxu1  ;;  %2062 = vst.msk [vmem:[%s2999_s7 + $0xa0] sm:$0xff] %vm264_vm0, %v1934_v30  ;;  %v1608_v62 = vadd.f32 %v3746_v7, %v478_v12  ;;  %v1640_v5 = vadd.f32 %v3748_v25, %v510_v43  ;;  %v418_v30 = vld [vmem:[#allocation2 + $0xc8] sm:$0xff] }
 0x14a   : > { %1703 = vst.msk [vmem:[#allocation2 + $0x1a0] sm:$0xff] %vm264_vm0, %v1575_v10  ;;  %v1545_v4 = vadd.f32 %v3760_v21, %v415_v11  ;;  %v1577_v51 = vadd.f32 %v1338_v13, %v447_v57  ;;  %v511_v13 = vld [vmem:[#allocation2 + $0x3b0] sm:$0xff]  ;;  %v513_v10 = vld [vmem:[#allocation2 + $0x3c0] sm:$0xff] }
 0x14b   : > { %1735 = vst.msk [vmem:[#allocation2 + $0x2a0] sm:$0xff] %vm264_vm0, %v1607_v38 }
 0x14c   : > { %1767 = vst.msk [vmem:[#allocation2 + $0x3a0] sm:$0xff] %vm264_vm0, %v1639_v9 }
 0x14d   : > { %1672 = vst.msk [vmem:[#allocation2 + $0xa8] sm:$0xff] %vm264_vm0, %v1544_v59 }
 0x14e   : > { %1704 = vst.msk [vmem:[#allocation2 + $0x1a8] sm:$0xff] %vm264_vm0, %v1576_v44 }
 0x14f   : > { %1736 = vst.msk [vmem:[#allocation2 + $0x2a8] sm:$0xff] %vm264_vm0, %v1608_v62 }
 0x150   : > { %v1418_v14 = vpop.f32.mrf.mxu2  ;;  %v3770_v17 = vpop.f32.mrf.mxu3  ;;  %1768 = vst.msk [vmem:[#allocation2 + $0x3a8] sm:$0xff] %vm264_vm0, %v1640_v5 }
 0x151   : > { %v3787_v0 = vpop.f32.mrf.mxu0  ;;  %v3800_v42 = vpop.f32.mrf.mxu1  ;;  %v1609_v15 = vadd.f32 %v1418_v14, %v479_v8  ;;  %v1834_v19 = vld [vmem:[#allocation2 + $0x1a0] sm:$0xff]  ;;  %1673 = vst.msk [vmem:[#allocation2 + $0xb0] sm:$0xff] %vm264_vm0, %v1545_v4  ;;  %v416_v14 = vld [vmem:[#allocation2 + $0xb8] sm:$0xff]  ;;  %v1641_v22 = vadd.f32 %v3770_v17, %v511_v13 }
 0x152   : > { %v1966_v31 = vadd.f32 %v3596_v45, %v1834_v19  ;;  %v1866_v7 = vld [vmem:[#allocation2 + $0x2a0] sm:$0xff]  ;;  %1705 = vst.msk [vmem:[#allocation2 + $0x1b0] sm:$0xff] %vm264_vm0, %v1577_v51  ;;  %v1546_v54 = vadd.f32 %v3787_v0, %v416_v14  ;;  %v1578_v20 = vadd.f32 %v3800_v42, %v448_v6 }
 0x153   : > { %v1998_v29 = vadd.f32 %v3596_v45, %v1866_v7  ;;  %v1898_v24 = vld [vmem:[#allocation2 + $0x3a0] sm:$0xff]  ;;  %1737 = vst.msk [vmem:[#allocation2 + $0x2b0] sm:$0xff] %vm264_vm0, %v1609_v15 }
 0x154   : > { %2094 = vst.msk [vmem:[%s2999_s7 + $0x1a0] sm:$0xff] %vm264_vm0, %v1966_v31  ;;  %v2030_v39 = vadd.f32 %v3596_v45, %v1898_v24  ;;  %v1803_v27 = vld [vmem:[#allocation2 + $0xa8] sm:$0xff]  ;;  %v449_v17 = vld [vmem:[#allocation2 + $0x1c0] sm:$0xff] }
 0x155   : > { %2126 = vst.msk [vmem:[%s2999_s7 + $0x2a0] sm:$0xff] %vm264_vm0, %v1998_v29  ;;  %v1935_v18 = vadd.f32 %v3596_v45, %v1803_v27  ;;  %v1835_v35 = vld [vmem:[#allocation2 + $0x1a8] sm:$0xff] }
 0x156   : > { %2158 = vst.msk [vmem:[%s2999_s7 + $0x3a0] sm:$0xff] %vm264_vm0, %v2030_v39  ;;  %v1967_v36 = vadd.f32 %v3596_v45, %v1835_v35  ;;  %v1867_v21 = vld [vmem:[#allocation2 + $0x2a8] sm:$0xff] }
 0x157   : > { %2063 = vst.msk [vmem:[%s2999_s7 + $0xa8] sm:$0xff] %vm264_vm0, %v1935_v18  ;;  %v1999_v33 = vadd.f32 %v3596_v45, %v1867_v21  ;;  %v1899_v34 = vld [vmem:[#allocation2 + $0x3a8] sm:$0xff] }
 0x158   : > { %v3805_v55 = vpop.f32.mrf.mxu2  ;;  %v3810_v56 = vpop.f32.mrf.mxu3  ;;  %2095 = vst.msk [vmem:[%s2999_s7 + $0x1a8] sm:$0xff] %vm264_vm0, %v1967_v36  ;;  %v2031_v37 = vadd.f32 %v3596_v45, %v1899_v34  ;;  %v1804_v46 = vld [vmem:[#allocation2 + $0xb0] sm:$0xff]  ;;  %v514_v39 = vld [vmem:[#allocation2 + $0x3c8] sm:$0xff] }
 0x159   : > { %v1263_v16 = vpop.f32.mrf.mxu0  ;;  %v1343_v2 = vpop.f32.mrf.mxu1  ;;  %2127 = vst.msk [vmem:[%s2999_s7 + $0x2a8] sm:$0xff] %vm264_vm0, %v1999_v33  ;;  %v1936_v48 = vadd.f32 %v3596_v45, %v1804_v46  ;;  %v1836_v40 = vld [vmem:[#allocation2 + $0x1b0] sm:$0xff]  ;;  %v1610_v3 = vadd.f32 %v3805_v55, %v480_v50  ;;  %v1642_v28 = vadd.f32 %v3810_v56, %v512_v1 }
 0x15a   : > { %2159 = vst.msk [vmem:[%s2999_s7 + $0x3a8] sm:$0xff] %vm264_vm0, %v2031_v37  ;;  %v1968_v49 = vadd.f32 %v3596_v45, %v1836_v40  ;;  %v1868_v52 = vld [vmem:[#allocation2 + $0x2b0] sm:$0xff]  ;;  %v1547_v0 = vadd.f32 %v1263_v16, %v417_v63  ;;  %v1579_v32 = vadd.f32 %v1343_v2, %v449_v17  ;;  %v450_v2 = vld [vmem:[#allocation2 + $0x1c8] sm:$0xff] }
 0x15b   : > { %2064 = vst.msk [vmem:[%s2999_s7 + $0xb0] sm:$0xff] %vm264_vm0, %v1936_v48  ;;  %v2000_v53 = vadd.f32 %v3596_v45, %v1868_v52  ;;  %v419_v36 = vld [vmem:[#allocation2 + $0xd0] sm:$0xff] }
 0x15c   : > { %2096 = vst.msk [vmem:[%s2999_s7 + $0x1b0] sm:$0xff] %vm264_vm0, %v1968_v49  ;;  %v451_v34 = vld [vmem:[#allocation2 + $0x1d0] sm:$0xff]  ;;  %v420_v49 = vld [vmem:[#allocation2 + $0xd8] sm:$0xff] }
 0x15d   : > { %2128 = vst.msk [vmem:[%s2999_s7 + $0x2b0] sm:$0xff] %vm264_vm0, %v2000_v53  ;;  %v483_v46 = vld [vmem:[#allocation2 + $0x2d0] sm:$0xff]  ;;  %v484_v53 = vld [vmem:[#allocation2 + $0x2d8] sm:$0xff] }
 0x15e   : > { %1769 = vst.msk [vmem:[#allocation2 + $0x3b0] sm:$0xff] %vm264_vm0, %v1641_v22  ;;  %v515_v48 = vld [vmem:[#allocation2 + $0x3d0] sm:$0xff]  ;;  %v452_v22 = vld [vmem:[#allocation2 + $0x1d8] sm:$0xff] }
 0x15f   : > { %1674 = vst.msk [vmem:[#allocation2 + $0xb8] sm:$0xff] %vm264_vm0, %v1546_v54 }
 0x160   : > { %v1423_v25 = vpop.f32.mrf.mxu2  ;;  %v1503_v26 = vpop.f32.mrf.mxu3  ;;  %1706 = vst.msk [vmem:[#allocation2 + $0x1b8] sm:$0xff] %vm264_vm0, %v1578_v20 }
 0x161   : > { %v1265_v47 = vpop.f32.mrf.mxu0  ;;  %v1345_v60 = vpop.f32.mrf.mxu1  ;;  %1738 = vst.msk [vmem:[#allocation2 + $0x2b8] sm:$0xff] %vm264_vm0, %v1610_v3  ;;  %v1611_v38 = vadd.f32 %v1423_v25, %v481_v58  ;;  %v1643_v61 = vadd.f32 %v1503_v26, %v513_v10  ;;  %v482_v25 = vld [vmem:[#allocation2 + $0x2c8] sm:$0xff] }
 0x162   : > { %1770 = vst.msk [vmem:[#allocation2 + $0x3b8] sm:$0xff] %vm264_vm0, %v1642_v28  ;;  %v1548_v9 = vadd.f32 %v1265_v47, %v418_v30  ;;  %v1580_v35 = vadd.f32 %v1345_v60, %v450_v2 }
 0x163   : > { %1675 = vst.msk [vmem:[#allocation2 + $0xc0] sm:$0xff] %vm264_vm0, %v1547_v0 }
 0x164   : > { %1707 = vst.msk [vmem:[#allocation2 + $0x1c0] sm:$0xff] %vm264_vm0, %v1579_v32 }
 0x165   : > { %v1900_v12 = vld [vmem:[#allocation2 + $0x3b0] sm:$0xff]  ;;  %1739 = vst.msk [vmem:[#allocation2 + $0x2c0] sm:$0xff] %vm264_vm0, %v1611_v38 }
 0x166   : > { %v2032_v59 = vadd.f32 %v3596_v45, %v1900_v12  ;;  %v1805_v43 = vld [vmem:[#allocation2 + $0xb8] sm:$0xff]  ;;  %1771 = vst.msk [vmem:[#allocation2 + $0x3c0] sm:$0xff] %vm264_vm0, %v1643_v61 }
 0x167   : > { %v1937_v44 = vadd.f32 %v3596_v45, %v1805_v43  ;;  %v1837_v11 = vld [vmem:[#allocation2 + $0x1b8] sm:$0xff]  ;;  %1676 = vst.msk [vmem:[#allocation2 + $0xc8] sm:$0xff] %vm264_vm0, %v1548_v9 }
 0x168   : > { %v1425_v41 = vpop.f32.mrf.mxu2  ;;  %v1505_v23 = vpop.f32.mrf.mxu3  ;;  %2160 = vst.msk [vmem:[%s2999_s7 + $0x3b0] sm:$0xff] %vm264_vm0, %v2032_v59  ;;  %v1969_v57 = vadd.f32 %v3596_v45, %v1837_v11  ;;  %v1869_v5 = vld [vmem:[#allocation2 + $0x2b8] sm:$0xff] }
 0x169   : > { %v1268_v42 = vpop.f32.mrf.mxu0  ;;  %v1348_v55 = vpop.f32.mrf.mxu1  ;;  %2065 = vst.msk [vmem:[%s2999_s7 + $0xb8] sm:$0xff] %vm264_vm0, %v1937_v44  ;;  %v2001_v8 = vadd.f32 %v3596_v45, %v1869_v5  ;;  %v1901_v4 = vld [vmem:[#allocation2 + $0x3b8] sm:$0xff]  ;;  %v1612_v33 = vadd.f32 %v1425_v41, %v482_v25  ;;  %v1644_v37 = vadd.f32 %v1505_v23, %v514_v39 }
 0x16a   : > { %2097 = vst.msk [vmem:[%s2999_s7 + $0x1b8] sm:$0xff] %vm264_vm0, %v1969_v57  ;;  %v2033_v51 = vadd.f32 %v3596_v45, %v1901_v4  ;;  %v1806_v16 = vld [vmem:[#allocation2 + $0xc0] sm:$0xff]  ;;  %v1549_v47 = vadd.f32 %v1268_v42, %v419_v36  ;;  %v1581_v6 = vadd.f32 %v1348_v55, %v451_v34  ;;  %v516_v55 = vld [vmem:[#allocation2 + $0x3d8] sm:$0xff] }
 0x16b   : > { %2129 = vst.msk [vmem:[%s2999_s7 + $0x2b8] sm:$0xff] %vm264_vm0, %v2001_v8  ;;  %v1938_v15 = vadd.f32 %v3596_v45, %v1806_v16  ;;  %v1838_v19 = vld [vmem:[#allocation2 + $0x1c0] sm:$0xff] }
 0x16c   : > { %2161 = vst.msk [vmem:[%s2999_s7 + $0x3b8] sm:$0xff] %vm264_vm0, %v2033_v51  ;;  %v1970_v31 = vadd.f32 %v3596_v45, %v1838_v19  ;;  %v1870_v7 = vld [vmem:[#allocation2 + $0x2c0] sm:$0xff] }
 0x16d   : > { %2066 = vst.msk [vmem:[%s2999_s7 + $0xc0] sm:$0xff] %vm264_vm0, %v1938_v15  ;;  %v2002_v24 = vadd.f32 %v3596_v45, %v1870_v7  ;;  %v1902_v26 = vld [vmem:[#allocation2 + $0x3c0] sm:$0xff]  ;;  %v422_v7 = vld [vmem:[#allocation2 + $0xe8] sm:$0xff] }
 0x16e   : > { %2098 = vst.msk [vmem:[%s2999_s7 + $0x1c0] sm:$0xff] %vm264_vm0, %v1970_v31  ;;  %v2034_v27 = vadd.f32 %v3596_v45, %v1902_v26  ;;  %v1807_v18 = vld [vmem:[#allocation2 + $0xc8] sm:$0xff]  ;;  %v453_v57 = vld [vmem:[#allocation2 + $0x1e0] sm:$0xff] }
 0x16f   : > { %2130 = vst.msk [vmem:[%s2999_s7 + $0x2c0] sm:$0xff] %vm264_vm0, %v2002_v24  ;;  %v1939_v21 = vadd.f32 %v3596_v45, %v1807_v18  ;;  %v485_v51 = vld [vmem:[#allocation2 + $0x2e0] sm:$0xff]  ;;  %v454_v24 = vld [vmem:[#allocation2 + $0x1e8] sm:$0xff] }
 0x170   : > { %v1428_v56 = vpop.f32.mrf.mxu2  ;;  %v1508_v62 = vpop.f32.mrf.mxu3  ;;  %2162 = vst.msk [vmem:[%s2999_s7 + $0x3c0] sm:$0xff] %vm264_vm0, %v2034_v27  ;;  %v517_v19 = vld [vmem:[#allocation2 + $0x3e0] sm:$0xff]  ;;  %v486_v27 = vld [vmem:[#allocation2 + $0x2e8] sm:$0xff] }
 0x171   : > { %v1270_v29 = vpop.f32.mrf.mxu0  ;;  %v1350_v13 = vpop.f32.mrf.mxu1  ;;  %2067 = vst.msk [vmem:[%s2999_s7 + $0xc8] sm:$0xff] %vm264_vm0, %v1939_v21  ;;  %v1613_v52 = vadd.f32 %v1428_v56, %v483_v46  ;;  %v1645_v50 = vadd.f32 %v1508_v62, %v515_v48  ;;  %v421_v56 = vld [vmem:[#allocation2 + $0xe0] sm:$0xff]  ;;  %v423_v21 = vld [vmem:[#allocation2 + $0xf0] sm:$0xff] }
 0x172   : > { %1708 = vst.msk [vmem:[#allocation2 + $0x1c8] sm:$0xff] %vm264_vm0, %v1580_v35  ;;  %v1550_v54 = vadd.f32 %v1270_v29, %v420_v49  ;;  %v1582_v1 = vadd.f32 %v1350_v13, %v452_v22  ;;  %v518_v35 = vld [vmem:[#allocation2 + $0x3e8] sm:$0xff] }
 0x173   : > { %1740 = vst.msk [vmem:[#allocation2 + $0x2c8] sm:$0xff] %vm264_vm0, %v1612_v33 }
 0x174   : > { %1772 = vst.msk [vmem:[#allocation2 + $0x3c8] sm:$0xff] %vm264_vm0, %v1644_v37 }
 0x175   : > { %1677 = vst.msk [vmem:[#allocation2 + $0xd0] sm:$0xff] %vm264_vm0, %v1549_v47 }
 0x176   : > { %1709 = vst.msk [vmem:[#allocation2 + $0x1d0] sm:$0xff] %vm264_vm0, %v1581_v6 }
 0x177   : > { %1741 = vst.msk [vmem:[#allocation2 + $0x2d0] sm:$0xff] %vm264_vm0, %v1613_v52 }
 0x178   : > { %v1430_v14 = vpop.f32.mrf.mxu2  ;;  %v1510_v40 = vpop.f32.mrf.mxu3  ;;  %1773 = vst.msk [vmem:[#allocation2 + $0x3d0] sm:$0xff] %vm264_vm0, %v1645_v50 }
 0x179   : > { %v1273_v60 = vpop.f32.mrf.mxu0  ;;  %v1614_v20 = vadd.f32 %v1430_v14, %v484_v53  ;;  %v1839_v63 = vld [vmem:[#allocation2 + $0x1c8] sm:$0xff]  ;;  %1678 = vst.msk [vmem:[#allocation2 + $0xd8] sm:$0xff] %vm264_vm0, %v1550_v54  ;;  %v1353_v41 = vpop.f32.mrf.mxu1  ;;  %v1646_v4 = vadd.f32 %v1510_v40, %v516_v55 }
 0x17a   : > { %v1971_v3 = vadd.f32 %v3596_v45, %v1839_v63  ;;  %v1871_v17 = vld [vmem:[#allocation2 + $0x2c8] sm:$0xff]  ;;  %1710 = vst.msk [vmem:[#allocation2 + $0x1d8] sm:$0xff] %vm264_vm0, %v1582_v1  ;;  %v1551_v15 = vadd.f32 %v1273_v60, %v421_v56  ;;  %v1583_v31 = vadd.f32 %v1353_v41, %v453_v57  ;;  %v455_v41 = vld [vmem:[#allocation2 + $0x1f0] sm:$0xff] }
 0x17b   : > { %v2003_v28 = vadd.f32 %v3596_v45, %v1871_v17  ;;  %v1903_v58 = vld [vmem:[#allocation2 + $0x3c8] sm:$0xff]  ;;  %1742 = vst.msk [vmem:[#allocation2 + $0x2d8] sm:$0xff] %vm264_vm0, %v1614_v20 }
 0x17c   : > { %2099 = vst.msk [vmem:[%s2999_s7 + $0x1c8] sm:$0xff] %vm264_vm0, %v1971_v3  ;;  %v2035_v10 = vadd.f32 %v3596_v45, %v1903_v58  ;;  %v1808_v32 = vld [vmem:[#allocation2 + $0xd0] sm:$0xff] }
 0x17d   : > { %2131 = vst.msk [vmem:[%s2999_s7 + $0x2c8] sm:$0xff] %vm264_vm0, %v2003_v28  ;;  %v1940_v30 = vadd.f32 %v3596_v45, %v1808_v32  ;;  %v1840_v38 = vld [vmem:[#allocation2 + $0x1d0] sm:$0xff] }
 0x17e   : > { %2163 = vst.msk [vmem:[%s2999_s7 + $0x3c8] sm:$0xff] %vm264_vm0, %v2035_v10  ;;  %v1972_v61 = vadd.f32 %v3596_v45, %v1840_v38  ;;  %v1872_v42 = vld [vmem:[#allocation2 + $0x2d0] sm:$0xff]  ;;  %v424_v38 = vld [vmem:[#allocation2 + $0xf8] sm:$0xff] }
 0x17f   : > { %2068 = vst.msk [vmem:[%s2999_s7 + $0xd0] sm:$0xff] %vm264_vm0, %v1940_v30  ;;  %v2004_v9 = vadd.f32 %v3596_v45, %v1872_v42  ;;  %v1904_v12 = vld [vmem:[#allocation2 + $0x3d0] sm:$0xff] }
 0x180   : > { %v1433_v23 = vpop.f32.mrf.mxu2  ;;  %v1513_v0 = vpop.f32.mrf.mxu3  ;;  %2100 = vst.msk [vmem:[%s2999_s7 + $0x1d0] sm:$0xff] %vm264_vm0, %v1972_v61  ;;  %v2036_v59 = vadd.f32 %v3596_v45, %v1904_v12  ;;  %v1809_v43 = vld [vmem:[#allocation2 + $0xd8] sm:$0xff] }
 0x181   : > { %v1275_v44 = vpop.f32.mrf.mxu0  ;;  %2132 = vst.msk [vmem:[%s2999_s7 + $0x2d0] sm:$0xff] %vm264_vm0, %v2004_v9  ;;  %v1941_v11 = vadd.f32 %v3596_v45, %v1809_v43  ;;  %v1841_v62 = vld [vmem:[#allocation2 + $0x1d8] sm:$0xff]  ;;  %v1355_v2 = vpop.f32.mrf.mxu1  ;;  %v1615_v29 = vadd.f32 %v1433_v23, %v485_v51  ;;  %v1647_v39 = vadd.f32 %v1513_v0, %v517_v19  ;;  %v487_v23 = vld [vmem:[#allocation2 + $0x2f0] sm:$0xff] }
 0x182   : > { %2164 = vst.msk [vmem:[%s2999_s7 + $0x3d0] sm:$0xff] %vm264_vm0, %v2036_v59  ;;  %v1973_v5 = vadd.f32 %v3596_v45, %v1841_v62  ;;  %v1873_v8 = vld [vmem:[#allocation2 + $0x2d8] sm:$0xff]  ;;  %v1552_v18 = vadd.f32 %v1275_v44, %v422_v7  ;;  %v1584_v36 = vadd.f32 %v1355_v2, %v454_v24  ;;  %v519_v0 = vld [vmem:[#allocation2 + $0x3f0] sm:$0xff] }
 0x183   : > { %2069 = vst.msk [vmem:[%s2999_s7 + $0xd8] sm:$0xff] %vm264_vm0, %v1941_v11  ;;  %v2005_v16 = vadd.f32 %v3596_v45, %v1873_v8  ;;  %v456_v12 = vld [vmem:[#allocation2 + $0x1f8] sm:$0xff] }
 0x184   : > { %2101 = vst.msk [vmem:[%s2999_s7 + $0x1d8] sm:$0xff] %vm264_vm0, %v1973_v5  ;;  %v488_v43 = vld [vmem:[#allocation2 + $0x2f8] sm:$0xff] }
 0x185   : > { %2133 = vst.msk [vmem:[%s2999_s7 + $0x2d8] sm:$0xff] %vm264_vm0, %v2005_v16  ;;  %v520_v11 = vld [vmem:[#allocation2 + $0x3f8] sm:$0xff] }
 0x186   : > { %1774 = vst.msk [vmem:[#allocation2 + $0x3d8] sm:$0xff] %vm264_vm0, %v1646_v4 }
 0x187   : > { %1679 = vst.msk [vmem:[#allocation2 + $0xe0] sm:$0xff] %vm264_vm0, %v1551_v15 }
 0x188   : > { %v1435_v25 = vpop.f32.mrf.mxu2  ;;  %v1515_v26 = vpop.f32.mrf.mxu3  ;;  %1711 = vst.msk [vmem:[#allocation2 + $0x1e0] sm:$0xff] %vm264_vm0, %v1583_v31 }
 0x189   : > { %1743 = vst.msk [vmem:[#allocation2 + $0x2e0] sm:$0xff] %vm264_vm0, %v1615_v29  ;;  %v1616_v33 = vadd.f32 %v1435_v25, %v486_v27  ;;  %v1648_v34 = vadd.f32 %v1515_v26, %v518_v35  ;;  %v1278_v13 = vpop.f32.mrf.mxu0  ;;  %v1358_v14 = vpop.f32.mrf.mxu1  ;;  %v2737_v29 = vld [vmem:[%s4020_s2] ss:$0 sm:$0xff] }
 0x18a   : > { %1775 = vst.msk [vmem:[#allocation2 + $0x3e0] sm:$0xff] %vm264_vm0, %v1647_v39  ;;  %v1553_v37 = vadd.f32 %v1278_v13, %v423_v21  ;;  %v1585_v30 = vadd.f32 %v1358_v14, %v455_v41 }
 0x18b   : > { %1680 = vst.msk [vmem:[#allocation2 + $0xe8] sm:$0xff] %vm264_vm0, %v1552_v18 }
 0x18c   : > { %1712 = vst.msk [vmem:[#allocation2 + $0x1e8] sm:$0xff] %vm264_vm0, %v1584_v36 }
 0x18d   : > { %v1905_v46 = vld [vmem:[#allocation2 + $0x3d8] sm:$0xff]  ;;  %1744 = vst.msk [vmem:[#allocation2 + $0x2e8] sm:$0xff] %vm264_vm0, %v1616_v33 }
 0x18e   : > { %v2037_v47 = vadd.f32 %v3596_v45, %v1905_v46  ;;  %v1810_v48 = vld [vmem:[#allocation2 + $0xe0] sm:$0xff]  ;;  %1776 = vst.msk [vmem:[#allocation2 + $0x3e8] sm:$0xff] %vm264_vm0, %v1648_v34 }
 0x18f   : > { %v1942_v6 = vadd.f32 %v3596_v45, %v1810_v48  ;;  %v1842_v49 = vld [vmem:[#allocation2 + $0x1e0] sm:$0xff]  ;;  %1681 = vst.msk [vmem:[#allocation2 + $0xf0] sm:$0xff] %vm264_vm0, %v1553_v37 }
 0x190   : > { %v1438_v40 = vpop.f32.mrf.mxu2  ;;  %v1518_v52 = vpop.f32.mrf.mxu3  ;;  %2165 = vst.msk [vmem:[%s2999_s7 + $0x3d8] sm:$0xff] %vm264_vm0, %v2037_v47  ;;  %v1974_v22 = vadd.f32 %v3596_v45, %v1842_v49  ;;  %v1874_v50 = vld [vmem:[#allocation2 + $0x2e0] sm:$0xff] }
 0x191   : > { %2070 = vst.msk [vmem:[%s2999_s7 + $0xe0] sm:$0xff] %vm264_vm0, %v1942_v6  ;;  %v2006_v53 = vadd.f32 %v3596_v45, %v1874_v50  ;;  %v1906_v54 = vld [vmem:[#allocation2 + $0x3e0] sm:$0xff]  ;;  %v1280_v61 = vpop.f32.mrf.mxu0  ;;  %v1617_v9 = vadd.f32 %v1438_v40, %v487_v23  ;;  %v1360_v55 = vpop.f32.mrf.mxu1  ;;  %v1649_v59 = vadd.f32 %v1518_v52, %v519_v0 }
 0x192   : > { %2102 = vst.msk [vmem:[%s2999_s7 + $0x1e0] sm:$0xff] %vm264_vm0, %v1974_v22  ;;  %v2038_v1 = vadd.f32 %v3596_v45, %v1906_v54  ;;  %v1811_v60 = vld [vmem:[#allocation2 + $0xe8] sm:$0xff]  ;;  %v1554_v44 = vadd.f32 %v1280_v61, %v424_v38  ;;  %v1586_v57 = vadd.f32 %v1360_v55, %v456_v12 }
 0x193   : > { %2134 = vst.msk [vmem:[%s2999_s7 + $0x2e0] sm:$0xff] %vm264_vm0, %v2006_v53  ;;  %v1943_v20 = vadd.f32 %v3596_v45, %v1811_v60  ;;  %v1843_v63 = vld [vmem:[#allocation2 + $0x1e8] sm:$0xff] }
 0x194   : > { %2166 = vst.msk [vmem:[%s2999_s7 + $0x3e0] sm:$0xff] %vm264_vm0, %v2038_v1  ;;  %v1975_v3 = vadd.f32 %v3596_v45, %v1843_v63  ;;  %v1875_v17 = vld [vmem:[#allocation2 + $0x2e8] sm:$0xff] }
 0x195   : > { %2071 = vst.msk [vmem:[%s2999_s7 + $0xe8] sm:$0xff] %vm264_vm0, %v1943_v20  ;;  %v2007_v28 = vadd.f32 %v3596_v45, %v1875_v17  ;;  %v1907_v58 = vld [vmem:[#allocation2 + $0x3e8] sm:$0xff] }
 0x196   : > { %2103 = vst.msk [vmem:[%s2999_s7 + $0x1e8] sm:$0xff] %vm264_vm0, %v1975_v3  ;;  %v2039_v10 = vadd.f32 %v3596_v45, %v1907_v58  ;;  %v1812_v32 = vld [vmem:[#allocation2 + $0xf0] sm:$0xff] }
 0x197   : > { %2135 = vst.msk [vmem:[%s2999_s7 + $0x2e8] sm:$0xff] %vm264_vm0, %v2007_v28  ;;  %v1944_v42 = vadd.f32 %v3596_v45, %v1812_v32 }
 0x198   : > { %2167 = vst.msk [vmem:[%s2999_s7 + $0x3e8] sm:$0xff] %vm264_vm0, %v2039_v10  ;;  %v1440_v56 = vpop.f32.mrf.mxu2  ;;  %v1520_v62 = vpop.f32.mrf.mxu3 }
 0x199   : > { %2072 = vst.msk [vmem:[%s2999_s7 + $0xf0] sm:$0xff] %vm264_vm0, %v1944_v42  ;;  %v1618_v5 = vadd.f32 %v1440_v56, %v488_v43  ;;  %v1650_v8 = vadd.f32 %v1520_v62, %v520_v11 }
 0x19a   : > { %1713 = vst.msk [vmem:[#allocation2 + $0x1f0] sm:$0xff] %vm264_vm0, %v1585_v30 }
 0x19b   : > { %1745 = vst.msk [vmem:[#allocation2 + $0x2f0] sm:$0xff] %vm264_vm0, %v1617_v9 }
 0x19c   : > { %1777 = vst.msk [vmem:[#allocation2 + $0x3f0] sm:$0xff] %vm264_vm0, %v1649_v59 }
 0x19d   : > { %1682 = vst.msk [vmem:[#allocation2 + $0xf8] sm:$0xff] %vm264_vm0, %v1554_v44 }
 0x19e   : > { %1714 = vst.msk [vmem:[#allocation2 + $0x1f8] sm:$0xff] %vm264_vm0, %v1586_v57 }
 0x19f   : > { %1746 = vst.msk [vmem:[#allocation2 + $0x2f8] sm:$0xff] %vm264_vm0, %v1618_v5 }
 0x1a0   : > { %1778 = vst.msk [vmem:[#allocation2 + $0x3f8] sm:$0xff] %vm264_vm0, %v1650_v8 }
 0x1a1   : > { %v1844_v4 = vld [vmem:[#allocation2 + $0x1f0] sm:$0xff] }
 0x1a2   : > { %v1976_v51 = vadd.f32 %v3596_v45, %v1844_v4  ;;  %v1876_v16 = vld [vmem:[#allocation2 + $0x2f0] sm:$0xff] }
 0x1a3   : > { %v2008_v15 = vadd.f32 %v3596_v45, %v1876_v16  ;;  %v1908_v19 = vld [vmem:[#allocation2 + $0x3f0] sm:$0xff] }
 0x1a4   : > { %2104 = vst.msk [vmem:[%s2999_s7 + $0x1f0] sm:$0xff] %vm264_vm0, %v1976_v51  ;;  %v2040_v2 = vadd.f32 %v3596_v45, %v1908_v19  ;;  %v1813_v31 = vld [vmem:[#allocation2 + $0xf8] sm:$0xff] }
 0x1a5   : > { %2136 = vst.msk [vmem:[%s2999_s7 + $0x2f0] sm:$0xff] %vm264_vm0, %v2008_v15  ;;  %v1945_v7 = vadd.f32 %v3596_v45, %v1813_v31  ;;  %v1845_v25 = vld [vmem:[#allocation2 + $0x1f8] sm:$0xff] }
 0x1a6   : > { %2168 = vst.msk [vmem:[%s2999_s7 + $0x3f0] sm:$0xff] %vm264_vm0, %v2040_v2  ;;  %v1977_v24 = vadd.f32 %v2737_v29, %v1845_v25  ;;  %v1877_v26 = vld [vmem:[#allocation2 + $0x2f8] sm:$0xff] }
 0x1a7   : > { %2073 = vst.msk [vmem:[%s2999_s7 + $0xf8] sm:$0xff] %vm264_vm0, %v1945_v7  ;;  %v2009_v39 = vadd.f32 %v2737_v29, %v1877_v26  ;;  %v1909_v27 = vld [vmem:[#allocation2 + $0x3f8] sm:$0xff] }
 0x1a8   : > { %2105 = vst.msk [vmem:[%s2999_s7 + $0x1f8] sm:$0xff] %vm264_vm0, %v1977_v24  ;;  %v2041_v18 = vadd.f32 %v2737_v29, %v1909_v27 }
 0x1a9   : > { %2137 = vst.msk [vmem:[%s2999_s7 + $0x2f8] sm:$0xff] %vm264_vm0, %v2009_v39 }
 0x1aa   : > { %2169 = vst.msk [vmem:[%s2999_s7 + $0x3f8] sm:$0xff] %vm264_vm0, %v2041_v18 }
 0x1ab PF: > { %s13_s14 = sadd.s32 1, %s2760_s14   ;;  %s4022_s12 = smov %s2756_s13 }
 0x1ac   : > { %p10_p5 = scmp.ge.s32.totalorder %s13_s14, 31   ;;  %s4023_s13 = smov %s4025_s15 }
 0x1ae   :  { %12 = sbr.rel (!%p10_p5) target bundleno = 2 (0x2), region = 76 }

</bundles_post_ra>
